<compile_context>
chip_gen: v7x
topology: tpu7x:2x2x1
jax: 0.10.0
libtpu: 0.0.40
codegen_flags: <defaults>
</compile_context>

<pallas_src>
import functools

import numpy as np
import jax
import jax.numpy as jnp
from jax import lax
from jax.experimental import pallas as pl
from jax.experimental.pallas import tpu as pltpu

LN_EPS = 1e-8


def _layernorm(x, gamma, beta):
    # x: (..., E); gamma/beta: (1, E) broadcast over leading dims.
    mu = jnp.mean(x, axis=-1, keepdims=True)
    var = jnp.mean((x - mu) ** 2, axis=-1, keepdims=True)
    return (x - mu) * lax.rsqrt(var + LN_EPS) * gamma + beta


def make_sasrec_kernel(num_layers, num_heads, batch_tile, seq_len, hidden):
    assert hidden % num_heads == 0, "hidden must be divisible by num_heads"
    head_dim = hidden // num_heads
    scale = 1.0 / float(np.sqrt(head_dim))
    rows = batch_tile * seq_len

    def kernel(x_ref, tmask_ref,
               ln1g_ref, ln1b_ref,
               wqT_ref, wkT_ref, wvT_ref, bq_ref, bk_ref, bv_ref,
               woT_ref, bo_ref,
               ln2g_ref, ln2b_ref,
               w1T_ref, b1_ref, w2T_ref, b2_ref,
               pos_ref, neg_ref, lastg_ref, lastb_ref,
               pos_out_ref, neg_out_ref,
               act_ref):
        layer = pl.program_id(1)

        # Load the embedded sequence into the resident VMEM activation at layer 0.
        @pl.when(layer == 0)
        def _():
            act_ref[...] = x_ref[...]

        x3 = act_ref[...]                                # (TB, S, E) f32
        tm = tmask_ref[...]                              # (TB, S, 1) f32 keep-mask
        x2 = x3.reshape(rows, hidden)                    # (R, E)

        def proj(a2_f32, wT_ref, b_ref):
            # bf16 operands on the MXU, f32 accumulation, f32 bias add.
            y = jnp.dot(a2_f32.astype(jnp.bfloat16), wT_ref[...],
                        preferred_element_type=jnp.float32)
            return y + b_ref[...]

        # --- attention layernorm (query path only, as in SASRec) ---
        q_in = _layernorm(x2, ln1g_ref[...], ln1b_ref[...])       # (R, E) f32

        # --- multi-head self-attention: Q = LN(x), K = V = x ---
        q = (proj(q_in, wqT_ref, bq_ref) * scale).reshape(batch_tile, seq_len, hidden)
        k = proj(x2, wkT_ref, bk_ref).reshape(batch_tile, seq_len, hidden)
        v = proj(x2, wvT_ref, bv_ref).reshape(batch_tile, seq_len, hidden)

        # Causal mask built in-kernel (no captured constants, f32 scores).
        row_ids = lax.broadcasted_iota(jnp.int32, (seq_len, seq_len), 0)
        col_ids = lax.broadcasted_iota(jnp.int32, (seq_len, seq_len), 1)
        neg_mask = jnp.where(col_ids <= row_ids, 0.0, -1e30).astype(jnp.float32)

        # Per-head attention; heads are folded directly through the matching row-slice
        # of the output projection and accumulated in f32 (no concat / lane shuffle).
        # TODO(synk): the per-head loop could become one batched-head dot_general when
        #             Mosaic supports multi-batch-dim dot_general in-kernel.
        mha = jnp.zeros((rows, hidden), jnp.float32)
        for h in range(num_heads):
            sl = slice(h * head_dim, (h + 1) * head_dim)
            qh = q[:, :, sl].astype(jnp.bfloat16)                  # (TB, S, hd)
            kh = k[:, :, sl].astype(jnp.bfloat16)
            vh = v[:, :, sl].astype(jnp.bfloat16)
            s = jnp.einsum('bqd,bkd->bqk', qh, kh,
                           preferred_element_type=jnp.float32) + neg_mask  # (TB,S,S) f32
            s = s - jnp.max(s, axis=-1, keepdims=True)
            p = jnp.exp(s)
            p = p * pl.reciprocal(jnp.sum(p, axis=-1, keepdims=True), approx=True)
            oh = jnp.einsum('bqk,bkd->bqd', p.astype(jnp.bfloat16), vh,
                            preferred_element_type=jnp.float32)    # (TB, S, hd) f32
            mha = mha + jnp.dot(oh.reshape(rows, head_dim).astype(jnp.bfloat16),
                                woT_ref[h * head_dim:(h + 1) * head_dim, :],
                                preferred_element_type=jnp.float32)
        mha = mha + bo_ref[...]                                    # (R, E)

        seqs = q_in + mha

        # --- forward layernorm + point-wise FFN (Conv1d k=1 -> matmul), residual to LN out ---
        fln = _layernorm(seqs, ln2g_ref[...], ln2b_ref[...])
        h1 = jnp.maximum(proj(fln, w1T_ref, b1_ref), 0.0)
        h2 = proj(h1, w2T_ref, b2_ref)
        out3 = (fln + h2).reshape(batch_tile, seq_len, hidden) * tm      # timeline mask

        act_ref[...] = out3

        # --- last layer: final layernorm + pos/neg logits, fused ---
        @pl.when(layer == num_layers - 1)
        def _():
            feats = _layernorm(out3, lastg_ref[...], lastb_ref[...])     # (TB, S, E)
            pos_out_ref[...] = jnp.sum(feats * pos_ref[...], axis=-1)    # (TB, S)
            neg_out_ref[...] = jnp.sum(feats * neg_ref[...], axis=-1)

    return kernel


def _pick_batch_tile(batch, seq_len):
    # Aim for >= 256 rows per grid step to fill the MXU M dimension,
    # while keeping TB an exact divisor of the batch.
    target = max(1, -(-256 // max(seq_len, 1)))
    tb = min(batch, target)
    while batch % tb != 0:
        tb -= 1
    return max(tb, 1)


def run_sasrec_core(seqs, tmask, pos_embs, neg_embs, p, num_heads):
    B, S, E = seqs.shape
    L = p["wqT"].shape[0]
    TB = _pick_batch_tile(B, S)
    nb = B // TB
    kernel = make_sasrec_kernel(L, num_heads, TB, S, E)

    per_batch = lambda shape: pl.BlockSpec(shape, lambda b, l: (b, 0, 0))
    per_layer = lambda shape: pl.BlockSpec(shape, lambda b, l: (l, 0, 0))
    shared = lambda shape: pl.BlockSpec(shape, lambda b, l: (0, 0))

    in_specs = [
        per_batch((TB, S, E)),                                   # seqs
        per_batch((TB, S, 1)),                                   # timeline keep-mask
        per_layer((None, 1, E)), per_layer((None, 1, E)),        # ln1 gamma/beta
        per_layer((None, E, E)), per_layer((None, E, E)), per_layer((None, E, E)),  # WqT WkT WvT
        per_layer((None, 1, E)), per_layer((None, 1, E)), per_layer((None, 1, E)),  # bq bk bv
        per_layer((None, E, E)), per_layer((None, 1, E)),        # WoT, bo
        per_layer((None, 1, E)), per_layer((None, 1, E)),        # ln2 gamma/beta
        per_layer((None, E, E)), per_layer((None, 1, E)),        # W1T, b1
        per_layer((None, E, E)), per_layer((None, 1, E)),        # W2T, b2
        per_batch((TB, S, E)), per_batch((TB, S, E)),            # pos/neg item embeddings
        shared((1, E)), shared((1, E)),                          # last layernorm gamma/beta
    ]
    out_specs = (pl.BlockSpec((TB, S), lambda b, l: (b, 0)),
                 pl.BlockSpec((TB, S), lambda b, l: (b, 0)))

    return pl.pallas_call(
        kernel,
        grid=(nb, L),
        in_specs=in_specs,
        out_specs=out_specs,
        out_shape=(jax.ShapeDtypeStruct((B, S), jnp.float32),
                   jax.ShapeDtypeStruct((B, S), jnp.float32)),
        scratch_shapes=[pltpu.VMEM((TB, S, E), jnp.float32)],    # resident activation
        compiler_params=pltpu.CompilerParams(
            dimension_semantics=("parallel", "arbitrary"),
            vmem_limit_bytes=32 * 1024 * 1024),
    )(
        seqs, tmask,
        p["ln1_g"], p["ln1_b"],
        p["wqT"], p["wkT"], p["wvT"], p["bq"], p["bk"], p["bv"],
        p["woT"], p["bo"],
        p["ln2_g"], p["ln2_b"],
        p["w1T"], p["b1"], p["w2T"], p["b2"],
        pos_embs, neg_embs,
        p["last_ln_g"], p["last_ln_b"],
    )


def init_params(key, item_num, maxlen, hidden, num_blocks):
    def nrm(k, shape, scale=0.02):
        return scale * jax.random.normal(k, shape, dtype=jnp.float32)

    keys = iter(jax.random.split(key, 2 + 8 * num_blocks))
    item_emb = nrm(next(keys), (item_num + 1, hidden))
    item_emb = item_emb.at[0].set(0.0)                           # padding_idx=0
    pos_emb = nrm(next(keys), (maxlen, hidden))

    wqT, wkT, wvT, bq, bk, bv = [], [], [], [], [], []
    woT, bo, w1T, b1, w2T, b2 = [], [], [], [], [], []
    for _ in range(num_blocks):
        in_w = nrm(next(keys), (3 * hidden, hidden))             # torch MHA in_proj_weight
        in_b = nrm(next(keys), (3 * hidden,))
        o_w = nrm(next(keys), (hidden, hidden))
        o_b = nrm(next(keys), (hidden,))
        c1_w = nrm(next(keys), (hidden, hidden))                 # Conv1d(k=1) weight squeezed
        c1_b = nrm(next(keys), (hidden,))
        c2_w = nrm(next(keys), (hidden, hidden))
        c2_b = nrm(next(keys), (hidden,))
        wqT.append(in_w[:hidden].T)
        wkT.append(in_w[hidden:2 * hidden].T)
        wvT.append(in_w[2 * hidden:].T)
        bq.append(in_b[:hidden].reshape(1, hidden))
        bk.append(in_b[hidden:2 * hidden].reshape(1, hidden))
        bv.append(in_b[2 * hidden:].reshape(1, hidden))
        woT.append(o_w.T); bo.append(o_b.reshape(1, hidden))
        w1T.append(c1_w.T); b1.append(c1_b.reshape(1, hidden))
        w2T.append(c2_w.T); b2.append(c2_b.reshape(1, hidden))

    stack = lambda xs, dt=jnp.float32: jnp.stack(xs).astype(dt)
    ones = jnp.ones((num_blocks, 1, hidden), jnp.float32)
    zeros = jnp.zeros((num_blocks, 1, hidden), jnp.float32)

    return dict(
        item_emb=item_emb, pos_emb=pos_emb,
        ln1_g=ones, ln1_b=zeros, ln2_g=ones, ln2_b=zeros,
        # matmul weights stored in bf16 (MXU operands); biases / LN params stay f32
        wqT=stack(wqT, jnp.bfloat16), wkT=stack(wkT, jnp.bfloat16), wvT=stack(wvT, jnp.bfloat16),
        bq=stack(bq), bk=stack(bk), bv=stack(bv),
        woT=stack(woT, jnp.bfloat16), bo=stack(bo),
        w1T=stack(w1T, jnp.bfloat16), b1=stack(b1),
        w2T=stack(w2T, jnp.bfloat16), b2=stack(b2),
        last_ln_g=jnp.ones((1, hidden), jnp.float32),
        last_ln_b=jnp.zeros((1, hidden), jnp.float32),
    )


@functools.partial(jax.jit, static_argnames=("num_heads",))
def sasrec_forward(params, log_seqs, pos_seqs, neg_seqs, *, num_heads):
    item_emb = params["item_emb"]
    pos_emb = params["pos_emb"]
    B, S = log_seqs.shape
    E = item_emb.shape[1]

    # --- embedding glue (gathers; handled by XLA outside the kernel) ---
    seqs = item_emb[log_seqs] * jnp.float32(np.sqrt(E))
    seqs = seqs + pos_emb[:S][None, :, :]
    tmask = (log_seqs != 0).astype(jnp.float32)[:, :, None]      # (B, S, 1) keep-mask
    seqs = seqs * tmask

    pos_embs = item_emb[pos_seqs]
    neg_embs = item_emb[neg_seqs]

    return run_sasrec_core(seqs, tmask, pos_embs, neg_embs, params, num_heads)


if __name__ == "__main__":
    # small, SASRec-consistent shapes
    batch, maxlen, hidden, num_heads, num_blocks = 2, 8, 32, 2, 2
    item_num = 50

    key = jax.random.PRNGKey(0)
    k_param, k_log, k_pos, k_neg = jax.random.split(key, 4)

    params = init_params(k_param, item_num, maxlen, hidden, num_blocks)

    log_seqs = jax.random.randint(k_log, (batch, maxlen), 0, item_num + 1, dtype=jnp.int32)
    log_seqs = log_seqs.at[:, :2].set(0)                         # some padding positions
    pos_seqs = jax.random.randint(k_pos, (batch, maxlen), 1, item_num + 1, dtype=jnp.int32)
    neg_seqs = jax.random.randint(k_neg, (batch, maxlen), 1, item_num + 1, dtype=jnp.int32)

    pos_logits, neg_logits = sasrec_forward(params, log_seqs, pos_seqs, neg_seqs,
                                            num_heads=num_heads)
    jax.block_until_ready((pos_logits, neg_logits))

    assert pos_logits.shape == (batch, maxlen) and neg_logits.shape == (batch, maxlen)
    assert bool(jnp.all(jnp.isfinite(pos_logits))) and bool(jnp.all(jnp.isfinite(neg_logits)))
    print("KERNEL_OK")
</pallas_src>

<mosaic_0001>
module attributes {stable_mosaic.version = 11 : i64} {
  func.func @kernel(%arg0: i32, %arg1: i32, %arg2: memref<2x8x32xf32, #tpu.memory_space<vmem>>, %arg3: memref<2x8x1xf32, #tpu.memory_space<vmem>>, %arg4: memref<1x1x32xf32, #tpu.memory_space<vmem>>, %arg5: memref<1x1x32xf32, #tpu.memory_space<vmem>>, %arg6: memref<1x32x32xbf16, #tpu.memory_space<vmem>>, %arg7: memref<1x32x32xbf16, #tpu.memory_space<vmem>>, %arg8: memref<1x32x32xbf16, #tpu.memory_space<vmem>>, %arg9: memref<1x1x32xf32, #tpu.memory_space<vmem>>, %arg10: memref<1x1x32xf32, #tpu.memory_space<vmem>>, %arg11: memref<1x1x32xf32, #tpu.memory_space<vmem>>, %arg12: memref<1x32x32xbf16, #tpu.memory_space<vmem>>, %arg13: memref<1x1x32xf32, #tpu.memory_space<vmem>>, %arg14: memref<1x1x32xf32, #tpu.memory_space<vmem>>, %arg15: memref<1x1x32xf32, #tpu.memory_space<vmem>>, %arg16: memref<1x32x32xbf16, #tpu.memory_space<vmem>>, %arg17: memref<1x1x32xf32, #tpu.memory_space<vmem>>, %arg18: memref<1x32x32xbf16, #tpu.memory_space<vmem>>, %arg19: memref<1x1x32xf32, #tpu.memory_space<vmem>>, %arg20: memref<2x8x32xf32, #tpu.memory_space<vmem>>, %arg21: memref<2x8x32xf32, #tpu.memory_space<vmem>>, %arg22: memref<1x32xf32, #tpu.memory_space<vmem>>, %arg23: memref<1x32xf32, #tpu.memory_space<vmem>>, %arg24: memref<2x8xf32, #tpu.memory_space<vmem>>, %arg25: memref<2x8xf32, #tpu.memory_space<vmem>>, %arg26: memref<2x8x32xf32, #tpu.memory_space<vmem>>) attributes {dimension_semantics = [#tpu.dimension_semantics<parallel>, #tpu.dimension_semantics<arbitrary>], iteration_bounds = array<i64: 1, 2>, scalar_prefetch = 0 : i64, scratch_operands = 1 : i64, tpu.core_type = #tpu.core_type<tc>, window_params = [{transform_indices = @transform_0, window_bounds = array<i64: 2, 8, 32>}, {transform_indices = @transform_1, window_bounds = array<i64: 2, 8, 1>}, {transform_indices = @transform_2, window_bounds = array<i64: 1, 1, 32>}, {transform_indices = @transform_3, window_bounds = array<i64: 1, 1, 32>}, {transform_indices = @transform_4, window_bounds = array<i64: 1, 32, 32>}, {transform_indices = @transform_5, window_bounds = array<i64: 1, 32, 32>}, {transform_indices = @transform_6, window_bounds = array<i64: 1, 32, 32>}, {transform_indices = @transform_7, window_bounds = array<i64: 1, 1, 32>}, {transform_indices = @transform_8, window_bounds = array<i64: 1, 1, 32>}, {transform_indices = @transform_9, window_bounds = array<i64: 1, 1, 32>}, {transform_indices = @transform_10, window_bounds = array<i64: 1, 32, 32>}, {transform_indices = @transform_11, window_bounds = array<i64: 1, 1, 32>}, {transform_indices = @transform_12, window_bounds = array<i64: 1, 1, 32>}, {transform_indices = @transform_13, window_bounds = array<i64: 1, 1, 32>}, {transform_indices = @transform_14, window_bounds = array<i64: 1, 32, 32>}, {transform_indices = @transform_15, window_bounds = array<i64: 1, 1, 32>}, {transform_indices = @transform_16, window_bounds = array<i64: 1, 32, 32>}, {transform_indices = @transform_17, window_bounds = array<i64: 1, 1, 32>}, {transform_indices = @transform_18, window_bounds = array<i64: 2, 8, 32>}, {transform_indices = @transform_19, window_bounds = array<i64: 2, 8, 32>}, {pipeline_mode = #tpu.pipeline_mode<synchronous>, transform_indices = @transform_20, window_bounds = array<i64: 1, 32>}, {pipeline_mode = #tpu.pipeline_mode<synchronous>, transform_indices = @transform_21, window_bounds = array<i64: 1, 32>}, {transform_indices = @transform_22, window_bounds = array<i64: 2, 8>}, {transform_indices = @transform_23, window_bounds = array<i64: 2, 8>}]} {
    %c0_i32 = arith.constant 0 : i32
    %0 = arith.cmpi eq, %arg1, %c0_i32 : i32
    %1 = arith.extui %0 : i1 to i32
    %c0_i32_0 = arith.constant 0 : i32
    %2 = arith.cmpi ne, %1, %c0_i32_0 : i32
    scf.if %2 {
      %c0_89 = arith.constant 0 : index
      %c0_90 = arith.constant 0 : index
      %c0_91 = arith.constant 0 : index
      %181 = vector.load %arg2[%c0_89, %c0_90, %c0_91] : memref<2x8x32xf32, #tpu.memory_space<vmem>>, vector<2x8x32xf32>
      %c0_92 = arith.constant 0 : index
      %c0_93 = arith.constant 0 : index
      %c0_94 = arith.constant 0 : index
      %182 = vector.load %arg26[%c0_92, %c0_93, %c0_94] : memref<2x8x32xf32, #tpu.memory_space<vmem>>, vector<2x8x32xf32>
      tpu.vector_store %arg26[%c0_92, %c0_93, %c0_94], %181 {strides = array<i32>} : memref<2x8x32xf32, #tpu.memory_space<vmem>>, vector<2x8x32xf32>,
    } else {
    }
    %c0 = arith.constant 0 : index
    %c0_1 = arith.constant 0 : index
    %c0_2 = arith.constant 0 : index
    %3 = vector.load %arg26[%c0, %c0_1, %c0_2] : memref<2x8x32xf32, #tpu.memory_space<vmem>>, vector<2x8x32xf32>
    %c0_3 = arith.constant 0 : index
    %c0_4 = arith.constant 0 : index
    %c0_5 = arith.constant 0 : index
    %4 = vector.load %arg3[%c0_3, %c0_4, %c0_5] : memref<2x8x1xf32, #tpu.memory_space<vmem>>, vector<2x8x1xf32>
    %5 = vector.shape_cast %3 : vector<2x8x32xf32> to vector<16x32xf32>
    %c0_6 = arith.constant 0 : index
    %c0_7 = arith.constant 0 : index
    %c0_8 = arith.constant 0 : index
    %6 = vector.load %arg4[%c0_6, %c0_7, %c0_8] : memref<1x1x32xf32, #tpu.memory_space<vmem>>, vector<1x1x32xf32>
    %7 = vector.shape_cast %6 : vector<1x1x32xf32> to vector<1x32xf32>
    %c0_9 = arith.constant 0 : index
    %c0_10 = arith.constant 0 : index
    %c0_11 = arith.constant 0 : index
    %8 = vector.load %arg5[%c0_9, %c0_10, %c0_11] : memref<1x1x32xf32, #tpu.memory_space<vmem>>, vector<1x1x32xf32>
    %9 = vector.shape_cast %8 : vector<1x1x32xf32> to vector<1x32xf32>
    %cst = arith.constant dense<0.000000e+00> : vector<16xf32>
    %10 = vector.multi_reduction <add>, %5, %cst [1] : vector<16x32xf32> to vector<16xf32>
    %11 = vector.shape_cast %10 : vector<16xf32> to vector<16x1xf32>
    %cst_12 = arith.constant 3.200000e+01 : f32
    %12 = vector.broadcast %cst_12 : f32 to vector<16x1xf32>
    %13 = arith.divf %11, %12 : vector<16x1xf32>
    %14 = vector.broadcast %13 : vector<16x1xf32> to vector<16x32xf32>
    %15 = arith.subf %5, %14 : vector<16x32xf32>
    %16 = arith.mulf %15, %15 : vector<16x32xf32>
    %cst_13 = arith.constant dense<0.000000e+00> : vector<16xf32>
    %17 = vector.multi_reduction <add>, %16, %cst_13 [1] : vector<16x32xf32> to vector<16xf32>
    %18 = vector.shape_cast %17 : vector<16xf32> to vector<16x1xf32>
    %cst_14 = arith.constant 3.200000e+01 : f32
    %19 = vector.broadcast %cst_14 : f32 to vector<16x1xf32>
    %20 = arith.divf %18, %19 : vector<16x1xf32>
    %21 = vector.broadcast %13 : vector<16x1xf32> to vector<16x32xf32>
    %22 = arith.subf %5, %21 : vector<16x32xf32>
    %cst_15 = arith.constant 9.99999993E-9 : f32
    %23 = vector.broadcast %cst_15 : f32 to vector<16x1xf32>
    %24 = arith.addf %20, %23 : vector<16x1xf32>
    %25 = math.rsqrt %24 : vector<16x1xf32>
    %26 = vector.broadcast %25 : vector<16x1xf32> to vector<16x32xf32>
    %27 = arith.mulf %22, %26 : vector<16x32xf32>
    %28 = vector.broadcast %7 : vector<1x32xf32> to vector<16x32xf32>
    %29 = arith.mulf %27, %28 : vector<16x32xf32>
    %30 = vector.broadcast %9 : vector<1x32xf32> to vector<16x32xf32>
    %31 = arith.addf %29, %30 : vector<16x32xf32>
    %32 = arith.truncf %31 : vector<16x32xf32> to vector<16x32xbf16>
    %c0_16 = arith.constant 0 : index
    %c0_17 = arith.constant 0 : index
    %c0_18 = arith.constant 0 : index
    %33 = vector.load %arg6[%c0_16, %c0_17, %c0_18] : memref<1x32x32xbf16, #tpu.memory_space<vmem>>, vector<1x32x32xbf16>
    %34 = vector.shape_cast %33 : vector<1x32x32xbf16> to vector<32x32xbf16>
    %cst_19 = arith.constant dense<0.000000e+00> : vector<16x32xf32>
    %35 = tpu.matmul %32, %34, %cst_19 {dimension_numbers = #tpu.dot_dimension_numbers<[1], [0], [0], [1], [0, 0, 1, 1], [], []>} : vector<16x32xbf16>, vector<32x32xbf16>, vector<16x32xf32> -> vector<16x32xf32>
    %c0_20 = arith.constant 0 : index
    %c0_21 = arith.constant 0 : index
    %c0_22 = arith.constant 0 : index
    %36 = vector.load %arg9[%c0_20, %c0_21, %c0_22] : memref<1x1x32xf32, #tpu.memory_space<vmem>>, vector<1x1x32xf32>
    %37 = vector.shape_cast %36 : vector<1x1x32xf32> to vector<1x32xf32>
    %38 = vector.broadcast %37 : vector<1x32xf32> to vector<16x32xf32>
    %39 = arith.addf %35, %38 : vector<16x32xf32>
    %cst_23 = arith.constant 2.500000e-01 : f32
    %40 = vector.broadcast %cst_23 : f32 to vector<16x32xf32>
    %41 = arith.mulf %39, %40 : vector<16x32xf32>
    %42 = vector.shape_cast %41 : vector<16x32xf32> to vector<2x8x32xf32>
    %43 = arith.truncf %5 : vector<16x32xf32> to vector<16x32xbf16>
    %c0_24 = arith.constant 0 : index
    %c0_25 = arith.constant 0 : index
    %c0_26 = arith.constant 0 : index
    %44 = vector.load %arg7[%c0_24, %c0_25, %c0_26] : memref<1x32x32xbf16, #tpu.memory_space<vmem>>, vector<1x32x32xbf16>
    %45 = vector.shape_cast %44 : vector<1x32x32xbf16> to vector<32x32xbf16>
    %cst_27 = arith.constant dense<0.000000e+00> : vector<16x32xf32>
    %46 = tpu.matmul %43, %45, %cst_27 {dimension_numbers = #tpu.dot_dimension_numbers<[1], [0], [0], [1], [0, 0, 1, 1], [], []>} : vector<16x32xbf16>, vector<32x32xbf16>, vector<16x32xf32> -> vector<16x32xf32>
    %c0_28 = arith.constant 0 : index
    %c0_29 = arith.constant 0 : index
    %c0_30 = arith.constant 0 : index
    %47 = vector.load %arg10[%c0_28, %c0_29, %c0_30] : memref<1x1x32xf32, #tpu.memory_space<vmem>>, vector<1x1x32xf32>
    %48 = vector.shape_cast %47 : vector<1x1x32xf32> to vector<1x32xf32>
    %49 = vector.broadcast %48 : vector<1x32xf32> to vector<16x32xf32>
    %50 = arith.addf %46, %49 : vector<16x32xf32>
    %51 = vector.shape_cast %50 : vector<16x32xf32> to vector<2x8x32xf32>
    %52 = arith.truncf %5 : vector<16x32xf32> to vector<16x32xbf16>
    %c0_31 = arith.constant 0 : index
    %c0_32 = arith.constant 0 : index
    %c0_33 = arith.constant 0 : index
    %53 = vector.load %arg8[%c0_31, %c0_32, %c0_33] : memref<1x32x32xbf16, #tpu.memory_space<vmem>>, vector<1x32x32xbf16>
    %54 = vector.shape_cast %53 : vector<1x32x32xbf16> to vector<32x32xbf16>
    %cst_34 = arith.constant dense<0.000000e+00> : vector<16x32xf32>
    %55 = tpu.matmul %52, %54, %cst_34 {dimension_numbers = #tpu.dot_dimension_numbers<[1], [0], [0], [1], [0, 0, 1, 1], [], []>} : vector<16x32xbf16>, vector<32x32xbf16>, vector<16x32xf32> -> vector<16x32xf32>
    %c0_35 = arith.constant 0 : index
    %c0_36 = arith.constant 0 : index
    %c0_37 = arith.constant 0 : index
    %56 = vector.load %arg11[%c0_35, %c0_36, %c0_37] : memref<1x1x32xf32, #tpu.memory_space<vmem>>, vector<1x1x32xf32>
    %57 = vector.shape_cast %56 : vector<1x1x32xf32> to vector<1x32xf32>
    %58 = vector.broadcast %57 : vector<1x32xf32> to vector<16x32xf32>
    %59 = arith.addf %55, %58 : vector<16x32xf32>
    %60 = vector.shape_cast %59 : vector<16x32xf32> to vector<2x8x32xf32>
    %61 = tpu.iota {dimensions = array<i32: 0>} : vector<8x8xi32>
    %62 = tpu.iota {dimensions = array<i32: 1>} : vector<8x8xi32>
    %63 = arith.cmpi sle, %62, %61 : vector<8x8xi32>
    %cst_38 = arith.constant 0.000000e+00 : f32
    %cst_39 = arith.constant -1.000000e+30 : f32
    %64 = vector.broadcast %cst_38 : f32 to vector<8x8xf32>
    %65 = vector.broadcast %cst_39 : f32 to vector<8x8xf32>
    %66 = arith.select %63, %64, %65 : vector<8x8xi1>, vector<8x8xf32>
    %cst_40 = arith.constant 0.000000e+00 : f32
    %67 = vector.broadcast %cst_40 : f32 to vector<16x32xf32>
    %68 = vector.extract_strided_slice %42 {offsets = [0, 0, 0], sizes = [2, 8, 16], strides = [1, 1, 1]} : vector<2x8x32xf32> to vector<2x8x16xf32>
    %69 = arith.truncf %68 : vector<2x8x16xf32> to vector<2x8x16xbf16>
    %70 = vector.extract_strided_slice %51 {offsets = [0, 0, 0], sizes = [2, 8, 16], strides = [1, 1, 1]} : vector<2x8x32xf32> to vector<2x8x16xf32>
    %71 = arith.truncf %70 : vector<2x8x16xf32> to vector<2x8x16xbf16>
    %72 = vector.extract_strided_slice %60 {offsets = [0, 0, 0], sizes = [2, 8, 16], strides = [1, 1, 1]} : vector<2x8x32xf32> to vector<2x8x16xf32>
    %73 = arith.truncf %72 : vector<2x8x16xf32> to vector<2x8x16xbf16>
    "tpu.trace_start"() <{level = 10 : i32, message = "bqd,bkd->bqk"}> : () -> ()
    %cst_41 = arith.constant dense<0.000000e+00> : vector<2x8x8xf32>
    %74 = tpu.matmul %69, %71, %cst_41 {dimension_numbers = #tpu.dot_dimension_numbers<[2], [2], [1], [1], [0, 0, 0, 1, 1, 1], [0], [0]>} : vector<2x8x16xbf16>, vector<2x8x16xbf16>, vector<2x8x8xf32> -> vector<2x8x8xf32>
    "tpu.trace_stop"() : () -> ()
    %75 = vector.shape_cast %66 : vector<8x8xf32> to vector<1x8x8xf32>
    %76 = vector.broadcast %75 : vector<1x8x8xf32> to vector<2x8x8xf32>
    %77 = arith.addf %74, %76 : vector<2x8x8xf32>
    %cst_42 = arith.constant dense<0xFF800000> : vector<2x8xf32>
    %78 = vector.multi_reduction <maximumf>, %77, %cst_42 [2] : vector<2x8x8xf32> to vector<2x8xf32>
    %79 = vector.shape_cast %78 : vector<2x8xf32> to vector<2x8x1xf32>
    %80 = vector.broadcast %79 : vector<2x8x1xf32> to vector<2x8x8xf32>
    %81 = arith.subf %77, %80 : vector<2x8x8xf32>
    %82 = math.exp %81 : vector<2x8x8xf32>
    %cst_43 = arith.constant dense<0.000000e+00> : vector<2x8xf32>
    %83 = vector.multi_reduction <add>, %82, %cst_43 [2] : vector<2x8x8xf32> to vector<2x8xf32>
    %84 = vector.shape_cast %83 : vector<2x8xf32> to vector<2x8x1xf32>
    %85 = tpu.reciprocal %84 {approx = true} : vector<2x8x1xf32> -> vector<2x8x1xf32>
    %86 = vector.broadcast %85 : vector<2x8x1xf32> to vector<2x8x8xf32>
    %87 = arith.mulf %82, %86 : vector<2x8x8xf32>
    %88 = arith.truncf %87 : vector<2x8x8xf32> to vector<2x8x8xbf16>
    "tpu.trace_start"() <{level = 10 : i32, message = "bqk,bkd->bqd"}> : () -> ()
    %cst_44 = arith.constant dense<0.000000e+00> : vector<2x8x16xf32>
    %89 = tpu.matmul %88, %73, %cst_44 {dimension_numbers = #tpu.dot_dimension_numbers<[2], [1], [1], [2], [0, 0, 0, 1, 1, 2], [0], [0]>} : vector<2x8x8xbf16>, vector<2x8x16xbf16>, vector<2x8x16xf32> -> vector<2x8x16xf32>
    "tpu.trace_stop"() : () -> ()
    %90 = vector.shape_cast %89 : vector<2x8x16xf32> to vector<16x16xf32>
    %91 = arith.truncf %90 : vector<16x16xf32> to vector<16x16xbf16>
    %c0_45 = arith.constant 0 : index
    %c0_46 = arith.constant 0 : index
    %c0_47 = arith.constant 0 : index
    %92 = vector.load %arg12[%c0_45, %c0_46, %c0_47] : memref<1x32x32xbf16, #tpu.memory_space<vmem>>, vector<1x16x32xbf16>
    %93 = vector.shape_cast %92 : vector<1x16x32xbf16> to vector<16x32xbf16>
    %cst_48 = arith.constant dense<0.000000e+00> : vector<16x32xf32>
    %94 = tpu.matmul %91, %93, %cst_48 {dimension_numbers = #tpu.dot_dimension_numbers<[1], [0], [0], [1], [0, 0, 1, 1], [], []>} : vector<16x16xbf16>, vector<16x32xbf16>, vector<16x32xf32> -> vector<16x32xf32>
    %95 = arith.addf %67, %94 : vector<16x32xf32>
    %96 = vector.extract_strided_slice %42 {offsets = [0, 0, 16], sizes = [2, 8, 16], strides = [1, 1, 1]} : vector<2x8x32xf32> to vector<2x8x16xf32>
    %97 = arith.truncf %96 : vector<2x8x16xf32> to vector<2x8x16xbf16>
    %98 = vector.extract_strided_slice %51 {offsets = [0, 0, 16], sizes = [2, 8, 16], strides = [1, 1, 1]} : vector<2x8x32xf32> to vector<2x8x16xf32>
    %99 = arith.truncf %98 : vector<2x8x16xf32> to vector<2x8x16xbf16>
    %100 = vector.extract_strided_slice %60 {offsets = [0, 0, 16], sizes = [2, 8, 16], strides = [1, 1, 1]} : vector<2x8x32xf32> to vector<2x8x16xf32>
    %101 = arith.truncf %100 : vector<2x8x16xf32> to vector<2x8x16xbf16>
    "tpu.trace_start"() <{level = 10 : i32, message = "bqd,bkd->bqk"}> : () -> ()
    %cst_49 = arith.constant dense<0.000000e+00> : vector<2x8x8xf32>
    %102 = tpu.matmul %97, %99, %cst_49 {dimension_numbers = #tpu.dot_dimension_numbers<[2], [2], [1], [1], [0, 0, 0, 1, 1, 1], [0], [0]>} : vector<2x8x16xbf16>, vector<2x8x16xbf16>, vector<2x8x8xf32> -> vector<2x8x8xf32>
    "tpu.trace_stop"() : () -> ()
    %103 = vector.shape_cast %66 : vector<8x8xf32> to vector<1x8x8xf32>
    %104 = vector.broadcast %103 : vector<1x8x8xf32> to vector<2x8x8xf32>
    %105 = arith.addf %102, %104 : vector<2x8x8xf32>
    %cst_50 = arith.constant dense<0xFF800000> : vector<2x8xf32>
    %106 = vector.multi_reduction <maximumf>, %105, %cst_50 [2] : vector<2x8x8xf32> to vector<2x8xf32>
    %107 = vector.shape_cast %106 : vector<2x8xf32> to vector<2x8x1xf32>
    %108 = vector.broadcast %107 : vector<2x8x1xf32> to vector<2x8x8xf32>
    %109 = arith.subf %105, %108 : vector<2x8x8xf32>
    %110 = math.exp %109 : vector<2x8x8xf32>
    %cst_51 = arith.constant dense<0.000000e+00> : vector<2x8xf32>
    %111 = vector.multi_reduction <add>, %110, %cst_51 [2] : vector<2x8x8xf32> to vector<2x8xf32>
    %112 = vector.shape_cast %111 : vector<2x8xf32> to vector<2x8x1xf32>
    %113 = tpu.reciprocal %112 {approx = true} : vector<2x8x1xf32> -> vector<2x8x1xf32>
    %114 = vector.broadcast %113 : vector<2x8x1xf32> to vector<2x8x8xf32>
    %115 = arith.mulf %110, %114 : vector<2x8x8xf32>
    %116 = arith.truncf %115 : vector<2x8x8xf32> to vector<2x8x8xbf16>
    "tpu.trace_start"() <{level = 10 : i32, message = "bqk,bkd->bqd"}> : () -> ()
    %cst_52 = arith.constant dense<0.000000e+00> : vector<2x8x16xf32>
    %117 = tpu.matmul %116, %101, %cst_52 {dimension_numbers = #tpu.dot_dimension_numbers<[2], [1], [1], [2], [0, 0, 0, 1, 1, 2], [0], [0]>} : vector<2x8x8xbf16>, vector<2x8x16xbf16>, vector<2x8x16xf32> -> vector<2x8x16xf32>
    "tpu.trace_stop"() : () -> ()
    %118 = vector.shape_cast %117 : vector<2x8x16xf32> to vector<16x16xf32>
    %119 = arith.truncf %118 : vector<16x16xf32> to vector<16x16xbf16>
    %c0_53 = arith.constant 0 : index
    %c16 = arith.constant 16 : index
    %c0_54 = arith.constant 0 : index
    %120 = vector.load %arg12[%c0_53, %c16, %c0_54] : memref<1x32x32xbf16, #tpu.memory_space<vmem>>, vector<1x16x32xbf16>
    %121 = vector.shape_cast %120 : vector<1x16x32xbf16> to vector<16x32xbf16>
    %cst_55 = arith.constant dense<0.000000e+00> : vector<16x32xf32>
    %122 = tpu.matmul %119, %121, %cst_55 {dimension_numbers = #tpu.dot_dimension_numbers<[1], [0], [0], [1], [0, 0, 1, 1], [], []>} : vector<16x16xbf16>, vector<16x32xbf16>, vector<16x32xf32> -> vector<16x32xf32>
    %123 = arith.addf %95, %122 : vector<16x32xf32>
    %c0_56 = arith.constant 0 : index
    %c0_57 = arith.constant 0 : index
    %c0_58 = arith.constant 0 : index
    %124 = vector.load %arg13[%c0_56, %c0_57, %c0_58] : memref<1x1x32xf32, #tpu.memory_space<vmem>>, vector<1x1x32xf32>
    %125 = vector.shape_cast %124 : vector<1x1x32xf32> to vector<1x32xf32>
    %126 = vector.broadcast %125 : vector<1x32xf32> to vector<16x32xf32>
    %127 = arith.addf %123, %126 : vector<16x32xf32>
    %128 = arith.addf %31, %127 : vector<16x32xf32>
    %c0_59 = arith.constant 0 : index
    %c0_60 = arith.constant 0 : index
    %c0_61 = arith.constant 0 : index
    %129 = vector.load %arg14[%c0_59, %c0_60, %c0_61] : memref<1x1x32xf32, #tpu.memory_space<vmem>>, vector<1x1x32xf32>
    %130 = vector.shape_cast %129 : vector<1x1x32xf32> to vector<1x32xf32>
    %c0_62 = arith.constant 0 : index
    %c0_63 = arith.constant 0 : index
    %c0_64 = arith.constant 0 : index
    %131 = vector.load %arg15[%c0_62, %c0_63, %c0_64] : memref<1x1x32xf32, #tpu.memory_space<vmem>>, vector<1x1x32xf32>
    %132 = vector.shape_cast %131 : vector<1x1x32xf32> to vector<1x32xf32>
    %cst_65 = arith.constant dense<0.000000e+00> : vector<16xf32>
    %133 = vector.multi_reduction <add>, %128, %cst_65 [1] : vector<16x32xf32> to vector<16xf32>
    %134 = vector.shape_cast %133 : vector<16xf32> to vector<16x1xf32>
    %cst_66 = arith.constant 3.200000e+01 : f32
    %135 = vector.broadcast %cst_66 : f32 to vector<16x1xf32>
    %136 = arith.divf %134, %135 : vector<16x1xf32>
    %137 = vector.broadcast %136 : vector<16x1xf32> to vector<16x32xf32>
    %138 = arith.subf %128, %137 : vector<16x32xf32>
    %139 = arith.mulf %138, %138 : vector<16x32xf32>
    %cst_67 = arith.constant dense<0.000000e+00> : vector<16xf32>
    %140 = vector.multi_reduction <add>, %139, %cst_67 [1] : vector<16x32xf32> to vector<16xf32>
    %141 = vector.shape_cast %140 : vector<16xf32> to vector<16x1xf32>
    %cst_68 = arith.constant 3.200000e+01 : f32
    %142 = vector.broadcast %cst_68 : f32 to vector<16x1xf32>
    %143 = arith.divf %141, %142 : vector<16x1xf32>
    %144 = vector.broadcast %136 : vector<16x1xf32> to vector<16x32xf32>
    %145 = arith.subf %128, %144 : vector<16x32xf32>
    %cst_69 = arith.constant 9.99999993E-9 : f32
    %146 = vector.broadcast %cst_69 : f32 to vector<16x1xf32>
    %147 = arith.addf %143, %146 : vector<16x1xf32>
    %148 = math.rsqrt %147 : vector<16x1xf32>
    %149 = vector.broadcast %148 : vector<16x1xf32> to vector<16x32xf32>
    %150 = arith.mulf %145, %149 : vector<16x32xf32>
    %151 = vector.broadcast %130 : vector<1x32xf32> to vector<16x32xf32>
    %152 = arith.mulf %150, %151 : vector<16x32xf32>
    %153 = vector.broadcast %132 : vector<1x32xf32> to vector<16x32xf32>
    %154 = arith.addf %152, %153 : vector<16x32xf32>
    %155 = arith.truncf %154 : vector<16x32xf32> to vector<16x32xbf16>
    %c0_70 = arith.constant 0 : index
    %c0_71 = arith.constant 0 : index
    %c0_72 = arith.constant 0 : index
    %156 = vector.load %arg16[%c0_70, %c0_71, %c0_72] : memref<1x32x32xbf16, #tpu.memory_space<vmem>>, vector<1x32x32xbf16>
    %157 = vector.shape_cast %156 : vector<1x32x32xbf16> to vector<32x32xbf16>
    %cst_73 = arith.constant dense<0.000000e+00> : vector<16x32xf32>
    %158 = tpu.matmul %155, %157, %cst_73 {dimension_numbers = #tpu.dot_dimension_numbers<[1], [0], [0], [1], [0, 0, 1, 1], [], []>} : vector<16x32xbf16>, vector<32x32xbf16>, vector<16x32xf32> -> vector<16x32xf32>
    %c0_74 = arith.constant 0 : index
    %c0_75 = arith.constant 0 : index
    %c0_76 = arith.constant 0 : index
    %159 = vector.load %arg17[%c0_74, %c0_75, %c0_76] : memref<1x1x32xf32, #tpu.memory_space<vmem>>, vector<1x1x32xf32>
    %160 = vector.shape_cast %159 : vector<1x1x32xf32> to vector<1x32xf32>
    %161 = vector.broadcast %160 : vector<1x32xf32> to vector<16x32xf32>
    %162 = arith.addf %158, %161 : vector<16x32xf32>
    %cst_77 = arith.constant 0.000000e+00 : f32
    %163 = vector.broadcast %cst_77 : f32 to vector<16x32xf32>
    %164 = arith.maximumf %162, %163 : vector<16x32xf32>
    %165 = arith.truncf %164 : vector<16x32xf32> to vector<16x32xbf16>
    %c0_78 = arith.constant 0 : index
    %c0_79 = arith.constant 0 : index
    %c0_80 = arith.constant 0 : index
    %166 = vector.load %arg18[%c0_78, %c0_79, %c0_80] : memref<1x32x32xbf16, #tpu.memory_space<vmem>>, vector<1x32x32xbf16>
    %167 = vector.shape_cast %166 : vector<1x32x32xbf16> to vector<32x32xbf16>
    %cst_81 = arith.constant dense<0.000000e+00> : vector<16x32xf32>
    %168 = tpu.matmul %165, %167, %cst_81 {dimension_numbers = #tpu.dot_dimension_numbers<[1], [0], [0], [1], [0, 0, 1, 1], [], []>} : vector<16x32xbf16>, vector<32x32xbf16>, vector<16x32xf32> -> vector<16x32xf32>
    %c0_82 = arith.constant 0 : index
    %c0_83 = arith.constant 0 : index
    %c0_84 = arith.constant 0 : index
    %169 = vector.load %arg19[%c0_82, %c0_83, %c0_84] : memref<1x1x32xf32, #tpu.memory_space<vmem>>, vector<1x1x32xf32>
    %170 = vector.shape_cast %169 : vector<1x1x32xf32> to vector<1x32xf32>
    %171 = vector.broadcast %170 : vector<1x32xf32> to vector<16x32xf32>
    %172 = arith.addf %168, %171 : vector<16x32xf32>
    %173 = arith.addf %154, %172 : vector<16x32xf32>
    %174 = vector.shape_cast %173 : vector<16x32xf32> to vector<2x8x32xf32>
    %175 = vector.broadcast %4 : vector<2x8x1xf32> to vector<2x8x32xf32>
    %176 = arith.mulf %174, %175 : vector<2x8x32xf32>
    %c0_85 = arith.constant 0 : index
    %c0_86 = arith.constant 0 : index
    %c0_87 = arith.constant 0 : index
    %177 = vector.load %arg26[%c0_85, %c0_86, %c0_87] : memref<2x8x32xf32, #tpu.memory_space<vmem>>, vector<2x8x32xf32>
    tpu.vector_store %arg26[%c0_85, %c0_86, %c0_87], %176 {strides = array<i32>} : memref<2x8x32xf32, #tpu.memory_space<vmem>>, vector<2x8x32xf32>,
    %c1_i32 = arith.constant 1 : i32
    %178 = arith.cmpi eq, %arg1, %c1_i32 : i32
    %179 = arith.extui %178 : i1 to i32
    %c0_i32_88 = arith.constant 0 : i32
    %180 = arith.cmpi ne, %179, %c0_i32_88 : i32
    scf.if %180 {
      %c0_89 = arith.constant 0 : index
      %c0_90 = arith.constant 0 : index
      %181 = vector.load %arg22[%c0_89, %c0_90] : memref<1x32xf32, #tpu.memory_space<vmem>>, vector<1x32xf32>
      %c0_91 = arith.constant 0 : index
      %c0_92 = arith.constant 0 : index
      %182 = vector.load %arg23[%c0_91, %c0_92] : memref<1x32xf32, #tpu.memory_space<vmem>>, vector<1x32xf32>
      %cst_93 = arith.constant dense<0.000000e+00> : vector<2x8xf32>
      %183 = vector.multi_reduction <add>, %176, %cst_93 [2] : vector<2x8x32xf32> to vector<2x8xf32>
      %184 = vector.shape_cast %183 : vector<2x8xf32> to vector<2x8x1xf32>
      %cst_94 = arith.constant 3.200000e+01 : f32
      %185 = vector.broadcast %cst_94 : f32 to vector<2x8x1xf32>
      %186 = arith.divf %184, %185 : vector<2x8x1xf32>
      %187 = vector.broadcast %186 : vector<2x8x1xf32> to vector<2x8x32xf32>
      %188 = arith.subf %176, %187 : vector<2x8x32xf32>
      %189 = arith.mulf %188, %188 : vector<2x8x32xf32>
      %cst_95 = arith.constant dense<0.000000e+00> : vector<2x8xf32>
      %190 = vector.multi_reduction <add>, %189, %cst_95 [2] : vector<2x8x32xf32> to vector<2x8xf32>
      %191 = vector.shape_cast %190 : vector<2x8xf32> to vector<2x8x1xf32>
      %cst_96 = arith.constant 3.200000e+01 : f32
      %192 = vector.broadcast %cst_96 : f32 to vector<2x8x1xf32>
      %193 = arith.divf %191, %192 : vector<2x8x1xf32>
      %194 = vector.broadcast %186 : vector<2x8x1xf32> to vector<2x8x32xf32>
      %195 = arith.subf %176, %194 : vector<2x8x32xf32>
      %cst_97 = arith.constant 9.99999993E-9 : f32
      %196 = vector.broadcast %cst_97 : f32 to vector<2x8x1xf32>
      %197 = arith.addf %193, %196 : vector<2x8x1xf32>
      %198 = math.rsqrt %197 : vector<2x8x1xf32>
      %199 = vector.broadcast %198 : vector<2x8x1xf32> to vector<2x8x32xf32>
      %200 = arith.mulf %195, %199 : vector<2x8x32xf32>
      %201 = vector.shape_cast %181 : vector<1x32xf32> to vector<1x1x32xf32>
      %202 = vector.broadcast %201 : vector<1x1x32xf32> to vector<2x8x32xf32>
      %203 = arith.mulf %200, %202 : vector<2x8x32xf32>
      %204 = vector.shape_cast %182 : vector<1x32xf32> to vector<1x1x32xf32>
      %205 = vector.broadcast %204 : vector<1x1x32xf32> to vector<2x8x32xf32>
      %206 = arith.addf %203, %205 : vector<2x8x32xf32>
      %c0_98 = arith.constant 0 : index
      %c0_99 = arith.constant 0 : index
      %c0_100 = arith.constant 0 : index
      %207 = vector.load %arg20[%c0_98, %c0_99, %c0_100] : memref<2x8x32xf32, #tpu.memory_space<vmem>>, vector<2x8x32xf32>
      %208 = arith.mulf %206, %207 : vector<2x8x32xf32>
      %cst_101 = arith.constant dense<0.000000e+00> : vector<2x8xf32>
      %209 = vector.multi_reduction <add>, %208, %cst_101 [2] : vector<2x8x32xf32> to vector<2x8xf32>
      %c0_102 = arith.constant 0 : index
      %c0_103 = arith.constant 0 : index
      %210 = vector.load %arg24[%c0_102, %c0_103] : memref<2x8xf32, #tpu.memory_space<vmem>>, vector<2x8xf32>
      tpu.vector_store %arg24[%c0_102, %c0_103], %209 {strides = array<i32>} : memref<2x8xf32, #tpu.memory_space<vmem>>, vector<2x8xf32>,
      %c0_104 = arith.constant 0 : index
      %c0_105 = arith.constant 0 : index
      %c0_106 = arith.constant 0 : index
      %211 = vector.load %arg21[%c0_104, %c0_105, %c0_106] : memref<2x8x32xf32, #tpu.memory_space<vmem>>, vector<2x8x32xf32>
      %212 = arith.mulf %206, %211 : vector<2x8x32xf32>
      %cst_107 = arith.constant dense<0.000000e+00> : vector<2x8xf32>
      %213 = vector.multi_reduction <add>, %212, %cst_107 [2] : vector<2x8x32xf32> to vector<2x8xf32>
      %c0_108 = arith.constant 0 : index
      %c0_109 = arith.constant 0 : index
      %214 = vector.load %arg25[%c0_108, %c0_109] : memref<2x8xf32, #tpu.memory_space<vmem>>, vector<2x8xf32>
      tpu.vector_store %arg25[%c0_108, %c0_109], %213 {strides = array<i32>} : memref<2x8xf32, #tpu.memory_space<vmem>>, vector<2x8xf32>,
    } else {
    }
    return
  }
  func.func @transform_0(%arg0: i32, %arg1: i32) -> (i32, i32, i32) {
    %c0_i32 = arith.constant 0 : i32
    %c0_i32_0 = arith.constant 0 : i32
    %c0_i32_1 = arith.constant 0 : i32
    return %arg0, %c0_i32, %c0_i32_0 : i32, i32, i32
  }
  func.func @transform_1(%arg0: i32, %arg1: i32) -> (i32, i32, i32) {
    %c0_i32 = arith.constant 0 : i32
    %c0_i32_0 = arith.constant 0 : i32
    %c0_i32_1 = arith.constant 0 : i32
    return %arg0, %c0_i32, %c0_i32_0 : i32, i32, i32
  }
  func.func @transform_2(%arg0: i32, %arg1: i32) -> (i32, i32, i32) {
    %c0_i32 = arith.constant 0 : i32
    %c0_i32_0 = arith.constant 0 : i32
    %c0_i32_1 = arith.constant 0 : i32
    return %arg1, %c0_i32, %c0_i32_0 : i32, i32, i32
  }
  func.func @transform_3(%arg0: i32, %arg1: i32) -> (i32, i32, i32) {
    %c0_i32 = arith.constant 0 : i32
    %c0_i32_0 = arith.constant 0 : i32
    %c0_i32_1 = arith.constant 0 : i32
    return %arg1, %c0_i32, %c0_i32_0 : i32, i32, i32
  }
  func.func @transform_4(%arg0: i32, %arg1: i32) -> (i32, i32, i32) {
    %c0_i32 = arith.constant 0 : i32
    %c0_i32_0 = arith.constant 0 : i32
    %c0_i32_1 = arith.constant 0 : i32
    return %arg1, %c0_i32, %c0_i32_0 : i32, i32, i32
  }
  func.func @transform_5(%arg0: i32, %arg1: i32) -> (i32, i32, i32) {
    %c0_i32 = arith.constant 0 : i32
    %c0_i32_0 = arith.constant 0 : i32
    %c0_i32_1 = arith.constant 0 : i32
    return %arg1, %c0_i32, %c0_i32_0 : i32, i32, i32
  }
  func.func @transform_6(%arg0: i32, %arg1: i32) -> (i32, i32, i32) {
    %c0_i32 = arith.constant 0 : i32
    %c0_i32_0 = arith.constant 0 : i32
    %c0_i32_1 = arith.constant 0 : i32
    return %arg1, %c0_i32, %c0_i32_0 : i32, i32, i32
  }
  func.func @transform_7(%arg0: i32, %arg1: i32) -> (i32, i32, i32) {
    %c0_i32 = arith.constant 0 : i32
    %c0_i32_0 = arith.constant 0 : i32
    %c0_i32_1 = arith.constant 0 : i32
    return %arg1, %c0_i32, %c0_i32_0 : i32, i32, i32
  }
  func.func @transform_8(%arg0: i32, %arg1: i32) -> (i32, i32, i32) {
    %c0_i32 = arith.constant 0 : i32
    %c0_i32_0 = arith.constant 0 : i32
    %c0_i32_1 = arith.constant 0 : i32
    return %arg1, %c0_i32, %c0_i32_0 : i32, i32, i32
  }
  func.func @transform_9(%arg0: i32, %arg1: i32) -> (i32, i32, i32) {
    %c0_i32 = arith.constant 0 : i32
    %c0_i32_0 = arith.constant 0 : i32
    %c0_i32_1 = arith.constant 0 : i32
    return %arg1, %c0_i32, %c0_i32_0 : i32, i32, i32
  }
  func.func @transform_10(%arg0: i32, %arg1: i32) -> (i32, i32, i32) {
    %c0_i32 = arith.constant 0 : i32
    %c0_i32_0 = arith.constant 0 : i32
    %c0_i32_1 = arith.constant 0 : i32
    return %arg1, %c0_i32, %c0_i32_0 : i32, i32, i32
  }
  func.func @transform_11(%arg0: i32, %arg1: i32) -> (i32, i32, i32) {
    %c0_i32 = arith.constant 0 : i32
    %c0_i32_0 = arith.constant 0 : i32
    %c0_i32_1 = arith.constant 0 : i32
    return %arg1, %c0_i32, %c0_i32_0 : i32, i32, i32
  }
  func.func @transform_12(%arg0: i32, %arg1: i32) -> (i32, i32, i32) {
    %c0_i32 = arith.constant 0 : i32
    %c0_i32_0 = arith.constant 0 : i32
    %c0_i32_1 = arith.constant 0 : i32
    return %arg1, %c0_i32, %c0_i32_0 : i32, i32, i32
  }
  func.func @transform_13(%arg0: i32, %arg1: i32) -> (i32, i32, i32) {
    %c0_i32 = arith.constant 0 : i32
    %c0_i32_0 = arith.constant 0 : i32
    %c0_i32_1 = arith.constant 0 : i32
    return %arg1, %c0_i32, %c0_i32_0 : i32, i32, i32
  }
  func.func @transform_14(%arg0: i32, %arg1: i32) -> (i32, i32, i32) {
    %c0_i32 = arith.constant 0 : i32
    %c0_i32_0 = arith.constant 0 : i32
    %c0_i32_1 = arith.constant 0 : i32
    return %arg1, %c0_i32, %c0_i32_0 : i32, i32, i32
  }
  func.func @transform_15(%arg0: i32, %arg1: i32) -> (i32, i32, i32) {
    %c0_i32 = arith.constant 0 : i32
    %c0_i32_0 = arith.constant 0 : i32
    %c0_i32_1 = arith.constant 0 : i32
    return %arg1, %c0_i32, %c0_i32_0 : i32, i32, i32
  }
  func.func @transform_16(%arg0: i32, %arg1: i32) -> (i32, i32, i32) {
    %c0_i32 = arith.constant 0 : i32
    %c0_i32_0 = arith.constant 0 : i32
    %c0_i32_1 = arith.constant 0 : i32
    return %arg1, %c0_i32, %c0_i32_0 : i32, i32, i32
  }
  func.func @transform_17(%arg0: i32, %arg1: i32) -> (i32, i32, i32) {
    %c0_i32 = arith.constant 0 : i32
    %c0_i32_0 = arith.constant 0 : i32
    %c0_i32_1 = arith.constant 0 : i32
    return %arg1, %c0_i32, %c0_i32_0 : i32, i32, i32
  }
  func.func @transform_18(%arg0: i32, %arg1: i32) -> (i32, i32, i32) {
    %c0_i32 = arith.constant 0 : i32
    %c0_i32_0 = arith.constant 0 : i32
    %c0_i32_1 = arith.constant 0 : i32
    return %arg0, %c0_i32, %c0_i32_0 : i32, i32, i32
  }
  func.func @transform_19(%arg0: i32, %arg1: i32) -> (i32, i32, i32) {
    %c0_i32 = arith.constant 0 : i32
    %c0_i32_0 = arith.constant 0 : i32
    %c0_i32_1 = arith.constant 0 : i32
    return %arg0, %c0_i32, %c0_i32_0 : i32, i32, i32
  }
  func.func @transform_20(%arg0: i32, %arg1: i32) -> (i32, i32) {
    %c0_i32 = arith.constant 0 : i32
    %c0_i32_0 = arith.constant 0 : i32
    %c0_i32_1 = arith.constant 0 : i32
    return %c0_i32, %c0_i32_0 : i32, i32
  }
  func.func @transform_21(%arg0: i32, %arg1: i32) -> (i32, i32) {
    %c0_i32 = arith.constant 0 : i32
    %c0_i32_0 = arith.constant 0 : i32
    %c0_i32_1 = arith.constant 0 : i32
    return %c0_i32, %c0_i32_0 : i32, i32
  }
  func.func @transform_22(%arg0: i32, %arg1: i32) -> (i32, i32) {
    %c0_i32 = arith.constant 0 : i32
    %c0_i32_0 = arith.constant 0 : i32
    return %arg0, %c0_i32 : i32, i32
  }
  func.func @transform_23(%arg0: i32, %arg1: i32) -> (i32, i32) {
    %c0_i32 = arith.constant 0 : i32
    %c0_i32_0 = arith.constant 0 : i32
    return %arg0, %c0_i32 : i32, i32
  }
}

</mosaic_0001>

<bundles_post_ra>
// kernel: sasrec_forward.1
= control target key start
LH: loop header
LB: loop body
LE: loop exit
PB: predicated region body
PF: predicated region fallthrough
CT: control target
= control target key end

     0   :  { %s3371_s0 = inlined_call_operand.vmem [shape: f32[2,8,32], index: 0, kind: input, shape index: {}]   ;;  %s3372_s1 = inlined_call_operand.vmem [shape: f32[2,8,1], index: 1, kind: input, shape index: {}]   ;;  %s3373_s2 = inlined_call_operand.vmem [shape: f32[2,1,32], index: 2, kind: input, shape index: {}]   ;;  %s3374_s3 = inlined_call_operand.vmem [shape: f32[2,1,32], index: 3, kind: input, shape index: {}]   ;;  %s3375_s4 = inlined_call_operand.vmem [shape: bf16[2,32,32], index: 4, kind: input, shape index: {}]   ;;  %s3376_s5 = inlined_call_operand.vmem [shape: bf16[2,32,32], index: 5, kind: input, shape index: {}]   ;;  %s3377_s6 = inlined_call_operand.vmem [shape: bf16[2,32,32], index: 6, kind: input, shape index: {}]   ;;  %s3378_s7 = inlined_call_operand.vmem [shape: f32[2,1,32], index: 7, kind: input, shape index: {}]   ;;  %s3379_s8 = inlined_call_operand.vmem [shape: f32[2,1,32], index: 8, kind: input, shape index: {}]   ;;  %s3380_s9 = inlined_call_operand.vmem [shape: f32[2,1,32], index: 9, kind: input, shape index: {}]   ;;  %s3381_s10 = inlined_call_operand.vmem [shape: bf16[2,32,32], index: 10, kind: input, shape index: {}]   ;;  %s3382_s11 = inlined_call_operand.vmem [shape: f32[2,1,32], index: 11, kind: input, shape index: {}]   ;;  %s3383_s12 = inlined_call_operand.vmem [shape: f32[2,1,32], index: 12, kind: input, shape index: {}]   ;;  %s3384_s13 = inlined_call_operand.vmem [shape: f32[2,1,32], index: 13, kind: input, shape index: {}]   ;;  %s3385_s14 = inlined_call_operand.vmem [shape: bf16[2,32,32], index: 14, kind: input, shape index: {}]   ;;  %s3386_s15 = inlined_call_operand.vmem [shape: f32[2,1,32], index: 15, kind: input, shape index: {}]   ;;  %s3387_s16 = inlined_call_operand.vmem [shape: bf16[2,32,32], index: 16, kind: input, shape index: {}]   ;;  %s3388_s17 = inlined_call_operand.vmem [shape: f32[2,1,32], index: 17, kind: input, shape index: {}]   ;;  %s3389_s18 = inlined_call_operand.vmem [shape: f32[2,8,32], index: 18, kind: input, shape index: {}]   ;;  %s3390_s19 = inlined_call_operand.vmem [shape: f32[2,8,32], index: 19, kind: input, shape index: {}]   ;;  %s3391_s20 = inlined_call_operand.vmem [shape: f32[1,32], index: 20, kind: input, shape index: {}]   ;;  %s3392_s21 = inlined_call_operand.vmem [shape: f32[1,32], index: 21, kind: input, shape index: {}]   ;;  %s3393_s22 = inlined_call_operand.hbm [shape: f32[2,8], index: 22, kind: output, shape index: {0}]   ;;  %s3394_s23 = inlined_call_operand.hbm [shape: f32[2,8], index: 23, kind: output, shape index: {1}]  }
   0x1   :  { %3404 = sst [smem:[#allocation13_spill]] %s3371_s0 }
   0x2   :  { %3405 = sst [smem:[#allocation14_spill]] %s3372_s1 }
   0x3   :  { %3406 = sst [smem:[#allocation15_spill]] %s3373_s2 }
   0x4   :  { %3407 = sst [smem:[#allocation16_spill]] %s3374_s3 }
   0x5   :  { %3408 = sst [smem:[#allocation17_spill]] %s3375_s4 }
   0x6   :  { %3409 = sst [smem:[#allocation18_spill]] %s3376_s5 }
   0x7   :  { %3410 = sst [smem:[#allocation19_spill]] %s3377_s6 }
   0x8   :  { %3411 = sst [smem:[#allocation20_spill]] %s3378_s7 }
   0x9   :  { %3412 = sst [smem:[#allocation21_spill]] %s3381_s10 }
   0xa   :  { %3413 = sst [smem:[#allocation22_spill]] %s3389_s18 }
   0xb   :  { %3414 = sst [smem:[#allocation23_spill]] %s3390_s19 }
   0xc   :  { %3415 = sst [smem:[#allocation24_spill]] %s3391_s20 }
   0xd   :  { %3416 = sst [smem:[#allocation25_spill]] %s3392_s21 }
   0xe   :  { %3417 = sst [smem:[#allocation26_spill]] %s3393_s22 }
   0xf   :  { %3418 = sst [smem:[#allocation27_spill]] %s3394_s23 }
  0x10   :  { %29 = vsyncpa [#allocation4], 0 }
  0x11   :  { %30 = vsyncpa [#allocation6], 0  ;;  %s2967_s4 = smov 0   ;;  %s2969_s30 = smov 0  }
  0x12   :  { %s2971_s24 = smov 0  }
  0x13 LB: > { %3419 = sst [smem:[#allocation9_spill]] %s2834_s30  ;;  %s45_s5 = sadd.s32 1, %s2834_s30  ;;  %s2838_s24 = sphi %s2971_s24, %s36_s24   ;;  %s2834_s30 = sphi %s2969_s30, %s3455_s30   ;;  %s2830_s4 = sphi %s2967_s4, %s3454_s4  }
  0x14   : > { %3420 = sst [smem:[#allocation10_spill]] %s2838_s24  ;;  %p46_p0 = scmp.ge.s32.totalorder %s45_s5, 2 }
  0x15   : > { %p2470_p1 = scmp.ge.s32.totalorder %s2838_s24, 1  ;;  %p828_p2 = scmp.lt.s32.totalorder %s2838_s24, 3 }
  0x16   : > { %s3457_s5 = smov (%p46_p0, %s45_s5), 0 }
  0x17   : > { %3421 = sst [smem:[#allocation11_spill]] %s3457_s5  ;;  %p829_p3 = pnand %p2470_p1, %p828_p2 }
  0x19   : > { %832 = sbr.rel (%p829_p3) target bundleno = 3387 (0xd3b), region = 108 }
  0x20   : > { %p974_p4 = scmp.lt.s32.totalorder %s2830_s4, 1  ;;  %s3425_s22 = sld [smem:[#allocation17_spill]] }
  0x21   : > { %s3426_s21 = sld [smem:[#allocation18_spill]]  ;;  %s3427_s7 = sld [smem:[#allocation19_spill]] }
  0x22   : > { %s2990_s1 = scalar_select %p974_p4, %s2830_s4, 1 }
  0x23   : > { %s3429_s10 = sld [smem:[#allocation21_spill]]  ;;  %p2483_p5 = scmp.ne.s32.totalorder %s2830_s4, 0 }
  0x24   : > { %s2530_s0 = sshll.u32 %s2990_s1, 4  ;;  %s1017_s29 = scalar_lea.vmem %s3384_s13, %s2990_s1  ;;  %vm1053_vm0 = vcmask (!%p2483_p5), 261120  }
  0x25   : > { %s3048_s5 = scalar_lea.vmem %s3385_s14, %s2530_s0  ;;  %s1025_s23 = scalar_lea.vmem %s3386_s15, %s2990_s1 }
  0x26   : > { %s3008_s24 = scalar_lea.vmem %s3425_s22, %s2530_s0  ;;  %s3057_s19 = scalar_lea.vmem %s3387_s16, %s2530_s0 }
  0x27   : > { %s3013_s20 = scalar_lea.vmem %s3426_s21, %s2530_s0  ;;  %s3018_s28 = scalar_lea.vmem %s3427_s7, %s2530_s0 }
  0x28   : > { %3428 = sst [smem:[#allocation12_spill]] %s3018_s28  ;;  %s1011_s21 = scalar_lea.vmem %s3382_s11, %s2990_s1 }
  0x29   : > { %s3031_s26 = scalar_lea.vmem %s3429_s10, %s2530_s0  ;;  %s1033_s7 = scalar_lea.vmem %s3388_s17, %s2990_s1 }
  0x2a   : > { %1050 = sbr.rel (%p2483_p5) target bundleno = 50 (0x32), region = 112  ;;  %s3430_s3 = sld [smem:[#allocation13_spill]] (!%p2483_p5) }
  0x30   : > { %v1051_v0 = vld [vmem:[%s3430_s3] sm:$0xff] (!%p2483_p5)  ;;  %v1052_v1 = vld [vmem:[%s3430_s3 + $0x8] sm:$0xff] (!%p2483_p5) }
  0x31   : > { %1054 = vst.msk [vmem:[#allocation2] sm:$0xff] %vm1053_vm0, %v1051_v0  ;;  %1055 = vst.msk [vmem:[#allocation2 + $0x8] sm:$0xff] %vm1053_vm0, %v1052_v1 }
  0x32 PF: > { %vm1062_vm1 = vcmask 261120   ;;  %v2716_v16 = vld [vmem:[%s3013_s20] sm:$0xff]   ;;  %v2840_v17 = vmov 0.0   ;;  %v2717_v18 = vld [vmem:[%s3013_s20 + $0x8] sm:$0xff]   ;;  %vm2841_vm2 = vmmov 0   ;;  %s3431_s10 = sld [smem:[#allocation12_spill]]  ;;  %s3436_s22 = scalar_lea.vmem %s3379_s8, %s2990_s1 }
  0x33   : > { %2579 = vmatprep.subr.bf16.mxu1 %v2840_v17  ;;  %2571 = vmatprep.subr.bf16.mxu0 %v2840_v17  ;;  %v2718_v20 = vld [vmem:[%s3008_s24] sm:$0xff]   ;;  %v2719_v21 = vld [vmem:[%s3008_s24 + $0x8] sm:$0xff]   ;;  %s3432_s0 = sld [smem:[#allocation15_spill]]  ;;  %s3434_s6 = sld [smem:[#allocation16_spill]]  ;;  %vm1320_vm3 = vcmask 130048   ;;  %vm1441_vm4 = vcmask 1043456  }
  0x34   : > { %2580 = vmatpush3.bf16.msra.mxu1 %v2716_v16  ;;  %2583 = vmatprep.mubr.msk.bf16.mxu1 %vm2841_vm2, %v2840_v17  ;;  %v2490_v41 = vld [vmem:[%s3436_s22] ss:$0 sm:$0xff]  ;;  %s3437_s24 = sld [smem:[#allocation20_spill]]  ;;  %s3439_s27 = scalar_lea.vmem %s3380_s9, %s2990_s1  ;;  %vm1413_vm6 = vcmask 64512  }
  0x35   : > { %2581 = vmatprep.subr.bf16.mxu1 %v2840_v17  ;;  %2575 = vmatprep.mubr.msk.bf16.mxu0 %vm2841_vm2, %v2840_v17  ;;  %v2494_v62 = vld [vmem:[%s3439_s27] ss:$0 sm:$0xff]  ;;  %s3440_s30 = scalar_lea.vmem %s3383_s12, %s2990_s1  ;;  %p2521_p6 = scmp.ne.s32.totalorder %s2830_s4, 1 }
  0x36   : > { %2572 = vmatpush3.bf16.msra.mxu0 %v2718_v20  ;;  %s3447_s20 = sld [smem:[#allocation23_spill]] (!%p2521_p6)  ;;  %vm2140_vm7 = vcmask (!%p2521_p6), 1041409   ;;  %vm2143_vm8 = vcmask (!%p2521_p6), 58368  }
  0x37   : > { %2573 = vmatprep.subr.bf16.mxu0 %v2840_v17 }
  0x38   : > { %v1056_v2 = vld [vmem:[#allocation2] sm:$0xff]  ;;  %v1057_v3 = vld [vmem:[#allocation2 + $0x8] sm:$0xff]  ;;  %2582 = vmatpush3.bf16.msra.mxu1 %v2717_v18 }
  0x39   : > { %v1063_v4 = vsel %vm1062_vm1, %v1056_v2, 0.0  ;;  %v1066_v5 = vsel %vm1062_vm1, %v1057_v3, 0.0  ;;  %v1176_v19 = vpack.c.bf16 %v1057_v3, %v1056_v2  ;;  %2595 = vmatprep.subr.bf16.mxu1 %v2840_v17  ;;  %s3433_s2 = scalar_lea.vmem %s3432_s0, %s2990_s1  ;;  %s3435_s28 = scalar_lea.vmem %s3434_s6, %s2990_s1  ;;  %v2720_v38 = vld [vmem:[%s3431_s10] sm:$0xff]   ;;  %v2721_v40 = vld [vmem:[%s3431_s10 + $0x8] sm:$0xff]  }
  0x3a   : > { %1064 = vadd.xlane.f32.xlu0 %v1063_v4  ;;  %2574 = vmatpush3.bf16.msra.mxu0 %v2719_v21  ;;  %v2484_v30 = vld [vmem:[%s3433_s2] ss:$0 sm:$0xff]  ;;  %s3438_s0 = scalar_lea.vmem %s3437_s24, %s2990_s1  ;;  %s2843_s6 = smov 112  }
  0x3b   : > { %2584 = vmatmul.mubr.msk.bf16.vlgmr.msra.gmra.mrb[0].mxu1 %vm1062_vm1, %v1176_v19  ;;  %2587 = vmatprep.subr.bf16.mxu0 %v2840_v17  ;;  %v2485_v34 = vld [vmem:[%s3435_s28] ss:$0 sm:$0xff]  ;;  %s3441_s24 = sld [smem:[#allocation14_spill]]  ;;  %s3444_s28 = sld [smem:[#allocation25_spill]] (!%p2521_p6) }
  0x3c   : > { %2597 = vmatprep.mubr.msk.bf16.mxu1 %vm2841_vm2, %v2840_v17  ;;  %v2486_v52 = vld [vmem:[%s3438_s0] ss:$0 sm:$0xff] }
  0x3e   : > { %1067 = vadd.xlane.f32.xlu0 %v1066_v5 }
  0x41   : > { %s3442_s0 = smov %s3441_s24 }
  0xc7   : > { %v1065_v6 = vpop.xlane.xlu0 %1064 }
  0xc8   : > { %v1070_v7 = vmul.f32 0.03125, %v1065_v6 }
  0xca   : > { %v1072_v8 = vsub.f32 %v1056_v2, %v1070_v7 }
  0xcb   : > { %v1068_v9 = vpop.xlane.xlu0 %1067 }
  0xcc   : > { %v1071_v10 = vmul.f32 0.03125, %v1068_v9  ;;  %v1074_v11 = vmul.f32 %v1072_v8, %v1072_v8 }
  0xce   : > { %v1073_v12 = vsub.f32 %v1057_v3, %v1071_v10  ;;  %v1076_v13 = vsel %vm1062_vm1, %v1074_v11, 0.0  ;;  %v1308_v10 = vlaneseq }
  0xcf   : > { %1077 = vadd.xlane.f32.xlu1 %v1076_v13  ;;  %v2842_v13 = vmov -1e+30  }
  0xd0   : > { %v1075_v14 = vmul.f32 %v1073_v12, %v1073_v12  ;;  %v3155_v11 = vshrl.u32 %v1308_v10, 7 }
  0xd2   : > { %v1079_v15 = vsel %vm1062_vm1, %v1075_v14, 0.0 }
  0xd3   : > { %1080 = vadd.xlane.f32.xlu1 %v1079_v15 }
 0x10e   : > { %v1237_v42 = vpop.f32.mrb[0].mxu1 }
 0x10f   : > { %v1238_v43 = vadd.f32 %v2490_v41, %v1237_v42  ;;  %v2585_v44 = vpop.f32.mrb[1].mxu1 }
 0x110   : > { %v1240_v45 = vpop.f32.mrb[2].mxu1 }
 0x111   : > { %v3122_v46 = vpack.c.bf16 %v1238_v43, %v1238_v43  ;;  %v1241_v47 = vadd.f32 %v2490_v41, %v1240_v45  ;;  %v2586_v48 = vpop.f32.mrb[3].mxu1 }
 0x113   : > { %v1325_v49 = vsel %vm1320_vm3, %v3122_v46, 0  ;;  %v1317_v50 = vpack.c.bf16 %v1241_v47, %v1241_v47 }
 0x114   : > { %2596 = vmatpush3.bf16.xpose.msra.mxu1 %v1325_v49 }
 0x115   : > { %v1371_v51 = vsel %vm1320_vm3, %v1317_v50, 0  ;;  %2607 = vmatprep.subr.bf16.mxu1 %v2840_v17 }
 0x15c   : > { %v1078_v22 = vpop.xlane.xlu1 %1077 }
 0x15d   : > { %v1082_v23 = vmul.f32 0.03125, %v1078_v22 }
 0x15f   : > { %v1084_v24 = vadd.f32 1e-08, %v1082_v23 }
 0x160   : > { %v1081_v25 = vpop.xlane.xlu1 %1080 }
 0x161   : > { %2728 = vrsqrt.f32 %v1084_v24  ;;  %v1083_v26 = vmul.f32 0.03125, %v1081_v25 }
 0x163   : > { %v1085_v27 = vadd.f32 1e-08, %v1083_v26 }
 0x165   : > { %2730 = vrsqrt.f32 %v1085_v27 }
 0x16b   : > { %v2729_v28 = vpop.eup %2728 }
 0x16c   : > { %v1088_v29 = vmul.f32 %v2729_v28, %v1072_v8 }
 0x16e   : > { %v1096_v33 = vmul.f32 %v2484_v30, %v1088_v29 }
 0x16f   : > { %v2731_v31 = vpop.eup %2730 }
 0x170   : > { %v1089_v32 = vmul.f32 %v2731_v31, %v1073_v12  ;;  %v3101_v36 = vadd.f32 %v2485_v34, %v1096_v33  ;;  %v3157_v12 = vand.u32 127, %v1308_v10 }
 0x172   : > { %v1097_v35 = vmul.f32 %v2484_v30, %v1089_v32  ;;  %vm1312_vm5 = vcmp.le.s32.totalorder %v3157_v12, %v3155_v11 }
 0x173   : > { %v3161_v14 = vsel %vm1312_vm5, 0.0, %v2842_v13 }
 0x174   : > { %v3103_v37 = vadd.f32 %v2485_v34, %v1097_v35 }
 0x176   : > { %v1106_v39 = vpack.c.bf16 %v3103_v37, %v3101_v36 }
 0x178   : > { %2576 = vmatmul.mubr.msk.bf16.vlgmr.msra.gmra.mrb[0].mxu0 %vm1062_vm1, %v1106_v39 }
 0x179   : > { %2588 = vmatpush3.bf16.msra.mxu0 %v2720_v38  ;;  %2591 = vmatprep.mubr.msk.bf16.mxu0 %vm2841_vm2, %v2840_v17 }
 0x17a   : > { %2589 = vmatprep.subr.bf16.mxu0 %v2840_v17 }
 0x17d   : > { %2590 = vmatpush3.bf16.msra.mxu0 %v2721_v40 }
 0x17e   : > { %2601 = vmatprep.subr.bf16.mxu0 %v2840_v17 }
 0x180   : > { %2592 = vmatmul.mubr.msk.bf16.vlgmr.msra.gmra.mrb[4].mxu0 %vm1062_vm1, %v1176_v19 }
 0x181   : > { %2603 = vmatprep.mubr.msk.bf16.mxu0 %vm2841_vm2, %v2840_v17 }
 0x186   : > { %2602 = vmatpush3.bf16.xpose.msra.mxu0 %v1371_v51 }
 0x187   : > { %2613 = vmatprep.subr.bf16.mxu0 %v2840_v17 }
 0x24b   : > { %v1167_v53 = vpop.f32.mrb[0].mxu0 }
 0x24c   : > { %v1168_v54 = vadd.f32 %v2486_v52, %v1167_v53  ;;  %v2577_v55 = vpop.f32.mrb[1].mxu0 }
 0x24d   : > { %v1170_v56 = vpop.f32.mrb[2].mxu0 }
 0x24e   : > { %v1174_v57 = vmul.f32 0.25, %v1168_v54  ;;  %v1171_v58 = vadd.f32 %v2486_v52, %v1170_v56  ;;  %v2578_v59 = vpop.f32.mrb[3].mxu0 }
 0x250   : > { %v1314_v60 = vpack.c.bf16 %v1174_v57, %v1174_v57  ;;  %v1175_v61 = vmul.f32 0.25, %v1171_v58 }
 0x252   : > { %v1315_v63 = vpack.c.bf16 %v1175_v61, %v1175_v61  ;;  %2598 = vmatmul.mubr.msk.bf16.vlgmr.msra.gmra.mrb[4].mxu1 %vm1320_vm3, %v1314_v60 }
 0x253   : > { %v1301_v0 = vpop.f32.mrb[4].mxu0  ;;  %2609 = vmatprep.mubr.msk.bf16.mxu1 %vm2841_vm2, %v2840_v17 }
 0x254   : > { %2604 = vmatmul.mubr.msk.bf16.vlgmr.msra.gmra.mrb[8].mxu0 %vm1320_vm3, %v1315_v63  ;;  %v1302_v1 = vadd.f32 %v2494_v62, %v1301_v0  ;;  %v2593_v2 = vpop.f32.mrb[5].mxu0 }
 0x255   : > { %v1304_v3 = vpop.f32.mrb[6].mxu0  ;;  %2615 = vmatprep.mubr.msk.bf16.mxu0 %vm2841_vm2, %v2840_v17 }
 0x256   : > { %v3145_v4 = vpack.c.bf16 %v1302_v1, %v1302_v1  ;;  %v1305_v5 = vadd.f32 %v2494_v62, %v1304_v3  ;;  %v2594_v6 = vpop.f32.mrb[7].mxu0 }
 0x258   : > { %v1443_v7 = vsel %vm1441_vm4, %v3145_v4, 0  ;;  %v3149_v8 = vpack.c.bf16 %v1305_v5, %v1305_v5 }
 0x259   : > { %2608 = vmatpush3.bf16.msra.mxu1 %v1443_v7 }
 0x25a   : > { %v1489_v9 = vsel %vm1441_vm4, %v3149_v8, 0  ;;  %2619 = vmatprep.subr.bf16.mxu1 %v2840_v17 }
 0x25b   : > { %2614 = vmatpush3.bf16.msra.mxu0 %v1489_v9 }
 0x25c   : > { %2625 = vmatprep.subr.bf16.mxu0 %v2840_v17 }
 0x325   : > { %v1361_v15 = vpop.f32.mrb[4].mxu1 }
 0x326   : > { %v1362_v16 = vadd.f32 %v1361_v15, %v3161_v14  ;;  %v2599_v18 = vpop.f32.mrb[5].mxu1 }
 0x327   : > { %v1364_v19 = vpop.f32.mrb[6].mxu1  ;;  %v1407_v20 = vpop.f32.mrb[8].mxu0 }
 0x328   : > { %v1408_v21 = vadd.f32 %v1407_v20, %v3161_v14  ;;  %v2600_v22 = vpop.f32.mrb[7].mxu1  ;;  %v2605_v23 = vpop.f32.mrb[9].mxu0  ;;  %v1414_v24 = vsel %vm1413_vm6, %v1362_v16, -inf }
 0x329   : > { %1415 = vmax.xlane.f32.xlu0 %v1414_v24  ;;  %v1410_v25 = vpop.f32.mrb[10].mxu0 }
 0x32a   : > { %v2606_v26 = vpop.f32.mrb[11].mxu0  ;;  %v1417_v27 = vsel %vm1413_vm6, %v1408_v21, -inf }
 0x32b   : > { %1418 = vmax.xlane.f32.xlu1 %v1417_v27 }
 0x33c   : > { %1590 = vrot.lane.b32.xlu1 %v1317_v50, %s2843_s6 }
 0x3b6   : > { %v1416_v28 = vpop.xlane.xlu0 %1415 }
 0x3b7   : > { %v1420_v29 = vsub.f32 %v1362_v16, %v1416_v28 }
 0x3b8   : > { %v1419_v30 = vpop.xlane.xlu1 %1418 }
 0x3b9   : > { %v1422_v31 = vmul.f32 1.442695, %v1420_v29  ;;  %v1421_v32 = vsub.f32 %v1408_v21, %v1419_v30 }
 0x3bb   : > { %2732 = vpow2.f32 %v1422_v31  ;;  %v1424_v33 = vmul.f32 1.442695, %v1421_v32 }
 0x3bc   : > { %v1591_v40 = vpop.permute.xlu1 %1590 }
 0x3bd   : > { %2734 = vpow2.f32 %v1424_v33  ;;  %v2723_v33 = vld [vmem:[%s3031_s26 + $0x8] sm:$0xff]  }
 0x3c5   : > { %v2733_v34 = vpop.eup %2732 }
 0x3c6   : > { %v1426_v35 = vsel %vm1413_vm6, %v2733_v34, 0.0 }
 0x3c7   : > { %v2735_v38 = vpop.eup %2734  ;;  %1427 = vadd.xlane.f32.xlu0 %v1426_v35 }
 0x3c8   : > { %v1429_v39 = vsel %vm1413_vm6, %v2735_v38, 0.0 }
 0x3c9   : > { %1430 = vadd.xlane.f32.xlu1 %v1429_v39 }
 0x3da   : > { %1535 = vrot.lane.b32.xlu1 %v1314_v60, %s2843_s6 }
 0x3dd   : > { %1538 = vrot.lane.b32.xlu0 %v3122_v46, %s2843_s6  ;;  %v1596_v46 = vsel %vm1320_vm3, %v1591_v40, 0 }
 0x3de   : > { %1587 = vrot.lane.b32.xlu1 %v1315_v63, %s2843_s6 }
 0x454   : > { %v1428_v41 = vpop.xlane.xlu0 %1427 }
 0x455   : > { %2736 = vrcp.f32 %v1428_v41 }
 0x456   : > { %v1431_v42 = vpop.xlane.xlu1 %1430 }
 0x457   : > { %2738 = vrcp.f32 %v1431_v42 }
 0x458   : > { %v1539_v47 = vpop.permute.xlu0 %1538 }
 0x459   : > { %v1544_v50 = vsel %vm1320_vm3, %v1539_v47, 0 }
 0x45a   : > { %v1536_v52 = vpop.permute.xlu1 %1535 }
 0x45e   : > { %v1588_v53 = vpop.permute.xlu1 %1587 }
 0x45f   : > { %v2737_v43 = vpop.eup %2736 }
 0x460   : > { %v1434_v44 = vmul.f32 %v2737_v43, %v2733_v34 }
 0x461   : > { %v2739_v45 = vpop.eup %2738 }
 0x462   : > { %v1435_v48 = vmul.f32 %v2739_v45, %v2735_v38  ;;  %v1436_v49 = vpack.c.bf16 %v1434_v44, %v1434_v44 }
 0x464   : > { %2610 = vmatmul.mubr.msk.bf16.vlgmr.msra.gmra.mrb[8].mxu1 %vm1413_vm6, %v1436_v49  ;;  %v1437_v51 = vpack.c.bf16 %v1435_v48, %v1435_v48 }
 0x465   : > { %2620 = vmatpush3.bf16.xpose.msra.mxu1 %v1544_v50  ;;  %2621 = vmatprep.mubr.msk.bf16.mxu1 %vm2841_vm2, %v2840_v17 }
 0x466   : > { %2616 = vmatmul.mubr.msk.bf16.vlgmr.msra.gmra.mrb[12].mxu0 %vm1413_vm6, %v1437_v51  ;;  %2631 = vmatprep.subr.bf16.mxu1 %v2840_v17 }
 0x467   : > { %2626 = vmatpush3.bf16.xpose.msra.mxu0 %v1596_v46  ;;  %2627 = vmatprep.mubr.msk.bf16.mxu0 %vm2841_vm2, %v2840_v17 }
 0x468   : > { %2637 = vmatprep.subr.bf16.mxu0 %v2840_v17 }
 0x46c   : > { %2622 = vmatmul.mubr.msk.bf16.vlgmr.msra.gmra.mrb[12].mxu1 %vm1320_vm3, %v1536_v52 }
 0x46d   : > { %2633 = vmatprep.mubr.msk.bf16.mxu1 %vm2841_vm2, %v2840_v17 }
 0x46e   : > { %2628 = vmatmul.mubr.msk.bf16.vlgmr.msra.gmra.mrb[16].mxu0 %vm1320_vm3, %v1588_v53 }
 0x46f   : > { %2639 = vmatprep.mubr.msk.bf16.mxu0 %vm2841_vm2, %v2840_v17 }
 0x537   : > { %v3190_v54 = vpop.f32.mrb[8].mxu1 }
 0x538   : > { %v2611_v55 = vpop.f32.mrb[9].mxu1 }
 0x539   : > { %v1482_v56 = vpop.f32.mrb[10].mxu1  ;;  %v3192_v57 = vpop.f32.mrb[12].mxu0 }
 0x53a   : > { %v1531_v58 = vpack.c.bf16 %v3192_v57, %v3190_v54  ;;  %v2612_v59 = vpop.f32.mrb[11].mxu1  ;;  %v2617_v60 = vpop.f32.mrb[13].mxu0  ;;  %v2510_v54 = vld [vmem:[%s1011_s21] ss:$0 sm:$0xff] }
 0x53b   : > { %v1528_v61 = vpop.f32.mrb[14].mxu0 }
 0x53c   : > { %v2618_v62 = vpop.f32.mrb[15].mxu0 }
 0x53f   : > { %v1580_v63 = vpop.f32.mrb[12].mxu1 }
 0x540   : > { %v1581_v0 = vadd.f32 %v1580_v63, %v3161_v14  ;;  %v2623_v1 = vpop.f32.mrb[13].mxu1 }
 0x541   : > { %v1583_v2 = vpop.f32.mrb[14].mxu1  ;;  %v1632_v3 = vpop.f32.mrb[16].mxu0 }
 0x542   : > { %v1633_v5 = vadd.f32 %v1632_v3, %v3161_v14  ;;  %v2624_v6 = vpop.f32.mrb[15].mxu1  ;;  %v2629_v7 = vpop.f32.mrb[17].mxu0  ;;  %v1638_v9 = vsel %vm1413_vm6, %v1581_v0, -inf }
 0x543   : > { %1639 = vmax.xlane.f32.xlu0 %v1638_v9  ;;  %v1635_v10 = vpop.f32.mrb[18].mxu0 }
 0x544   : > { %v2630_v13 = vpop.f32.mrb[19].mxu0  ;;  %v1641_v15 = vsel %vm1413_vm6, %v1633_v5, -inf }
 0x545   : > { %1642 = vmax.xlane.f32.xlu1 %v1641_v15 }
 0x556   : > { %1712 = vrot.lane.b32.xlu1 %v3149_v8, %s2843_s6 }
 0x5d0   : > { %v1640_v16 = vpop.xlane.xlu0 %1639 }
 0x5d1   : > { %v1644_v18 = vsub.f32 %v1581_v0, %v1640_v16  ;;  %v2725_v16 = vld [vmem:[%s3048_s5 + $0x8] sm:$0xff]  }
 0x5d2   : > { %v1643_v19 = vpop.xlane.xlu1 %1642 }
 0x5d3   : > { %v1646_v20 = vmul.f32 1.442695, %v1644_v18  ;;  %v1645_v21 = vsub.f32 %v1633_v5, %v1643_v19 }
 0x5d5   : > { %2740 = vpow2.f32 %v1646_v20  ;;  %v1648_v14 = vmul.f32 1.442695, %v1645_v21 }
 0x5d6   : > { %v1713_v22 = vpop.permute.xlu1 %1712 }
 0x5d7   : > { %2742 = vpow2.f32 %v1648_v14  ;;  %v1718_v23 = vsel %vm1441_vm4, %v1713_v22, 0 }
 0x5d8   : > { %2638 = vmatpush3.bf16.msra.mxu0 %v1718_v23 }
 0x5d9   : > { %2649 = vmatprep.subr.bf16.mxu0 %v2840_v17 }
 0x5df   : > { %v2741_v24 = vpop.eup %2740 }
 0x5e0   : > { %v1650_v25 = vsel %vm1413_vm6, %v2741_v24, 0.0 }
 0x5e1   : > { %v2743_v26 = vpop.eup %2742  ;;  %1651 = vadd.xlane.f32.xlu0 %v1650_v25 }
 0x5e2   : > { %v1653_v8 = vsel %vm1413_vm6, %v2743_v26, 0.0 }
 0x5e5   : > { %1654 = vadd.xlane.f32.xlu0 %v1653_v8 }
 0x5fb   : > { %1663 = vrot.lane.b32.xlu0 %v3145_v4, %s2843_s6  ;;  %v2722_v4 = vld [vmem:[%s3031_s26] sm:$0xff]  }
 0x66e   : > { %v1652_v27 = vpop.xlane.xlu0 %1651 }
 0x66f   : > { %2744 = vrcp.f32 %v1652_v27 }
 0x672   : > { %v1655_v28 = vpop.xlane.xlu0 %1654 }
 0x673   : > { %2746 = vrcp.f32 %v1655_v28  ;;  %v2512_v28 = vld [vmem:[%s1017_s29] ss:$0 sm:$0xff] }
 0x676   : > { %v1664_v29 = vpop.permute.xlu0 %1663 }
 0x677   : > { %v1669_v30 = vsel %vm1441_vm4, %v1664_v29, 0 }
 0x678   : > { %2632 = vmatpush3.bf16.msra.mxu1 %v1669_v30 }
 0x679   : > { %v2745_v31 = vpop.eup %2744  ;;  %2643 = vmatprep.subr.bf16.mxu1 %v2840_v17 }
 0x67a   : > { %v1658_v32 = vmul.f32 %v2745_v31, %v2741_v24  ;;  %v2511_v24 = vld [vmem:[%s3440_s30] ss:$0 sm:$0xff]  ;;  %s3445_s30 = sld [smem:[#allocation22_spill]] (!%p2521_p6) }
 0x67c   : > { %v1660_v34 = vpack.c.bf16 %v1658_v32, %v1658_v32 }
 0x67d   : > { %v2747_v35 = vpop.eup %2746 }
 0x67e   : > { %v1659_v38 = vmul.f32 %v2747_v35, %v2743_v26  ;;  %2634 = vmatmul.mubr.msk.bf16.vlgmr.msra.gmra.mrb[16].mxu1 %vm1413_vm6, %v1660_v34  ;;  %v2727_v34 = vld [vmem:[%s3057_s19 + $0x8] sm:$0xff]   ;;  %v1058_v35 = vld [vmem:[%s3441_s24] sm:$0xff] }
 0x67f   : > { %2644 = vmatpush3.bf16.msra.mxu1 %v2723_v33  ;;  %2645 = vmatprep.mubr.msk.bf16.mxu1 %vm2841_vm2, %v2840_v17  ;;  %v2726_v33 = vld [vmem:[%s3057_s19] sm:$0xff]  }
 0x680   : > { %v1661_v39 = vpack.c.bf16 %v1659_v38, %v1659_v38  ;;  %2655 = vmatprep.subr.bf16.mxu1 %v2840_v17  ;;  %v1059_v38 = vld [vmem:[%s3442_s0 + $0x8] sm:$0xff] }
 0x682   : > { %2640 = vmatmul.mubr.msk.bf16.vlgmr.msra.gmra.mrb[20].mxu0 %vm1413_vm6, %v1661_v39 }
 0x683   : > { %2650 = vmatpush3.bf16.msra.mxu0 %v2722_v4  ;;  %2651 = vmatprep.mubr.msk.bf16.mxu0 %vm2841_vm2, %v2840_v17  ;;  %v2844_v4 = vmov 0  }
 0x684   : > { %2663 = vmatprep.subr.bf16.mxu0 %v2840_v17  ;;  %2714 = vset.pattern.permute.xlu0 %v2844_v4 }
 0x685   : > { %2715 = vset.pattern.permute.xlu1 %v2844_v4 }
 0x68a   : > { %2652 = vmatmul.mubr.msk.bf16.vlgmr.msra.gmra.mrb[24].mxu0 %vm1320_vm3, %v1531_v58 }
 0x68b   : > { %2667 = vmatprep.mubr.msk.bf16.mxu0 %vm2841_vm2, %v2840_v17  ;;  %2664 = vmatpush3.bf16.msra.mxu0 %v2726_v33  ;;  %v2146_v33 = vld [vmem:[%s3447_s20 + $0x8] sm:$0xff] (!%p2521_p6) }
 0x68c   : > { %2665 = vmatprep.subr.bf16.mxu0 %v2840_v17 }
 0x68f   : > { %2666 = vmatpush3.bf16.msra.mxu0 %v2727_v34 }
 0x751   : > { %v1705_v40 = vpop.f32.mrb[16].mxu1 }
 0x752   : > { %v2635_v41 = vpop.f32.mrb[17].mxu1 }
 0x753   : > { %v1708_v42 = vpop.f32.mrb[18].mxu1 }
 0x754   : > { %v2636_v43 = vpop.f32.mrb[19].mxu1 }
 0x755   : > { %v1754_v44 = vpop.f32.mrb[20].mxu0 }
 0x756   : > { %v1760_v45 = vpack.c.bf16 %v1754_v44, %v1705_v40  ;;  %v2641_v47 = vpop.f32.mrb[21].mxu0 }
 0x757   : > { %v1757_v48 = vpop.f32.mrb[22].mxu0 }
 0x758   : > { %v2642_v49 = vpop.f32.mrb[23].mxu0  ;;  %2646 = vmatmul.mubr.msk.bf16.vlgmr.msra.gmra.mrb[20].mxu1 %vm1320_vm3, %v1760_v45 }
 0x759   : > { %2659 = vmatprep.mubr.msk.bf16.mxu1 %vm2841_vm2, %v2840_v17  ;;  %v2517_v49 = vld [vmem:[%s1033_s7] ss:$0 sm:$0xff] }
 0x75d   : > { %v1856_v50 = vpop.f32.mrb[24].mxu0 }
 0x75e   : > { %v2653_v51 = vpop.f32.mrb[25].mxu0 }
 0x75f   : > { %v1859_v46 = vpop.f32.mrb[26].mxu0 }
 0x760   : > { %v2654_v52 = vpop.f32.mrb[27].mxu0 }
 0x82b   : > { %v1806_v53 = vpop.f32.mrb[20].mxu1 }
 0x82c   : > { %v1857_v55 = vadd.f32 %v1856_v50, %v1806_v53  ;;  %v2647_v56 = vpop.f32.mrb[21].mxu1 }
 0x82d   : > { %v1809_v57 = vpop.f32.mrb[22].mxu1 }
 0x82e   : > { %v1870_v58 = vadd.f32 %v2510_v54, %v1857_v55  ;;  %v1860_v59 = vadd.f32 %v1859_v46, %v1809_v57  ;;  %v2648_v60 = vpop.f32.mrb[23].mxu1 }
 0x830   : > { %v1871_v61 = vadd.f32 %v2510_v54, %v1860_v59  ;;  %v1872_v62 = vadd.f32 %v1870_v58, %v3101_v36 }
 0x832   : > { %v1876_v63 = vsel %vm1062_vm1, %v1872_v62, 0.0  ;;  %v1873_v0 = vadd.f32 %v1871_v61, %v3103_v37  ;;  %v2724_v37 = vld [vmem:[%s3048_s5] sm:$0xff]   ;;  %s3446_s5 = smov (!%p2521_p6), %s3445_s30 }
 0x833   : > { %1877 = vadd.xlane.f32.xlu1 %v1876_v63  ;;  %2656 = vmatpush3.bf16.msra.mxu1 %v2724_v37 }
 0x834   : > { %v1879_v1 = vsel %vm1062_vm1, %v1873_v0, 0.0  ;;  %2657 = vmatprep.subr.bf16.mxu1 %v2840_v17  ;;  %v2513_v17 = vld [vmem:[%s1025_s23] ss:$0 sm:$0xff]  ;;  %s3443_s23 = sld [smem:[#allocation24_spill]] (!%p2521_p6) }
 0x835   : > { %1880 = vadd.xlane.f32.xlu0 %v1879_v1 }
 0x837   : > { %2658 = vmatpush3.bf16.msra.mxu1 %v2725_v16 }
 0x8c0   : > { %v1878_v2 = vpop.xlane.xlu1 %1877 }
 0x8c1   : > { %v1882_v3 = vmul.f32 0.03125, %v1878_v2 }
 0x8c2   : > { %v1881_v5 = vpop.xlane.xlu0 %1880 }
 0x8c3   : > { %v1884_v6 = vsub.f32 %v1872_v62, %v1882_v3  ;;  %v1883_v7 = vmul.f32 0.03125, %v1881_v5 }
 0x8c5   : > { %v1885_v9 = vsub.f32 %v1873_v0, %v1883_v7  ;;  %v1886_v10 = vmul.f32 %v1884_v6, %v1884_v6 }
 0x8c7   : > { %v1888_v13 = vsel %vm1062_vm1, %v1886_v10, 0.0  ;;  %v1887_v36 = vmul.f32 %v1885_v9, %v1885_v9 }
 0x8c8   : > { %1889 = vadd.xlane.f32.xlu0 %v1888_v13 }
 0x8c9   : > { %v1891_v15 = vsel %vm1062_vm1, %v1887_v36, 0.0 }
 0x8ca   : > { %1892 = vadd.xlane.f32.xlu1 %v1891_v15 }
 0x8db   : > { %2065 = vperm.xlu1 %2715, %v1059_v38  }
 0x8de   : > { %2060 = vperm.xlu0 %2714, %v1058_v35  }
 0x955   : > { %v1890_v18 = vpop.xlane.xlu0 %1889 }
 0x956   : > { %v1894_v19 = vmul.f32 0.03125, %v1890_v18 }
 0x957   : > { %v1893_v20 = vpop.xlane.xlu1 %1892 }
 0x958   : > { %v1896_v21 = vadd.f32 1e-08, %v1894_v19  ;;  %v1895_v14 = vmul.f32 0.03125, %v1893_v20  ;;  %v2522_v20 = vld [vmem:[%s3443_s23] ss:$0 sm:$0xff] (!%p2521_p6) }
 0x95a   : > { %2748 = vrsqrt.f32 %v1896_v21  ;;  %v1897_v22 = vadd.f32 1e-08, %v1895_v14  ;;  %v2523_v14 = vld [vmem:[%s3444_s28] ss:$0 sm:$0xff] (!%p2521_p6) }
 0x95b   : > { %v2066_v57 = vpop.permute.xlu1 %2065 }
 0x95c   : > { %2750 = vrsqrt.f32 %v1897_v22 }
 0x95d   : > { %v2061_v53 = vpop.permute.xlu0 %2060 }
 0x964   : > { %v2749_v23 = vpop.eup %2748 }
 0x965   : > { %v1900_v25 = vmul.f32 %v2749_v23, %v1884_v6 }
 0x966   : > { %v2751_v26 = vpop.eup %2750 }
 0x967   : > { %v1908_v8 = vmul.f32 %v2511_v24, %v1900_v25  ;;  %v1901_v27 = vmul.f32 %v2751_v26, %v1885_v9 }
 0x969   : > { %v1909_v29 = vmul.f32 %v2511_v24, %v1901_v27  ;;  %v1916_v30 = vadd.f32 %v2512_v28, %v1908_v8  ;;  %v2120_v24 = vld [vmem:[%s3445_s30] sm:$0xff] (!%p2521_p6) }
 0x96a   : > { %v2145_v8 = vld [vmem:[%s3447_s20] sm:$0xff] (!%p2521_p6) }
 0x96b   : > { %v1917_v31 = vadd.f32 %v2512_v28, %v1909_v29  ;;  %v2121_v29 = vld [vmem:[%s3446_s5 + $0x8] sm:$0xff] (!%p2521_p6) }
 0x96d   : > { %v1918_v32 = vpack.c.bf16 %v1917_v31, %v1916_v30 }
 0x96f   : > { %2660 = vmatmul.mubr.msk.bf16.vlgmr.msra.gmra.mrb[24].mxu1 %vm1062_vm1, %v1918_v32 }
 0xa42   : > { %v1979_v39 = vpop.f32.mrb[24].mxu1 }
 0xa43   : > { %v1980_v40 = vadd.f32 %v2513_v17, %v1979_v39  ;;  %v2661_v41 = vpop.f32.mrb[25].mxu1 }
 0xa44   : > { %v1982_v42 = vpop.f32.mrb[26].mxu1 }
 0xa45   : > { %v1983_v43 = vadd.f32 %v2513_v17, %v1982_v42  ;;  %v2662_v44 = vpop.f32.mrb[27].mxu1  ;;  %v1986_v45 = vmax.f32 %v1980_v40, 0.0  ;;  %v2134_v40 = vsub.s32 (!%p2521_p6), %v3157_v12, %v3155_v11 }
 0xa47   : > { %v1987_v47 = vmax.f32 %v1983_v43, 0.0 }
 0xa49   : > { %v1988_v48 = vpack.c.bf16 %v1987_v47, %v1986_v45 }
 0xa4b   : > { %2668 = vmatmul.mubr.msk.bf16.vlgmr.msra.gmra.mrb[28].mxu0 %vm1062_vm1, %v1988_v48 }
 0xb1e   : > { %v2049_v50 = vpop.f32.mrb[28].mxu0 }
 0xb1f   : > { %v2050_v51 = vadd.f32 %v2517_v49, %v2049_v50  ;;  %v2669_v46 = vpop.f32.mrb[29].mxu0 }
 0xb20   : > { %v2052_v52 = vpop.f32.mrb[30].mxu0 }
 0xb21   : > { %v2053_v54 = vadd.f32 %v2517_v49, %v2052_v52  ;;  %v2670_v55 = vpop.f32.mrb[31].mxu0  ;;  %v2056_v56 = vadd.f32 %v2050_v51, %v1916_v30  ;;  %2075 = sbr.rel (%p2521_p6) target bundleno = 3323 (0xcfb), region = 116 }
 0xb23   : > { %v2068_v58 = vmul.f32 %v2061_v53, %v2056_v56  ;;  %v2057_v59 = vadd.f32 %v2053_v54, %v1917_v31 }
 0xb25   : > { %2070 = vst.msk [vmem:[#allocation2] sm:$0xff] %vm1062_vm1, %v2068_v58  ;;  %v2069_v60 = vmul.f32 %v2066_v57, %v2057_v59  ;;  %v2078_v61 = vsel (!%p2521_p6), %vm1062_vm1, %v2068_v58, 0.0 }
 0xb26   : > { %2079 = vadd.xlane.f32.xlu0 (!%p2521_p6), %v2078_v61 }
 0xb27   : > { %2071 = vst.msk [vmem:[#allocation2 + $0x8] sm:$0xff] %vm1062_vm1, %v2069_v60  ;;  %v2081_v62 = vsel (!%p2521_p6), %vm1062_vm1, %v2069_v60, 0.0 }
 0xb2a   : > { %2082 = vadd.xlane.f32.xlu0 %v2081_v62 }
 0xbb3   : > { %v2080_v63 = vpop.xlane.xlu0 %2079 }
 0xbb4   : > { %v2084_v0 = vmul.f32 0.03125, %v2080_v63 }
 0xbb6   : > { %v2086_v1 = vsub.f32 %v2068_v58, %v2084_v0 }
 0xbb7   : > { %v2083_v2 = vpop.xlane.xlu0 %2082 }
 0xbb8   : > { %v2085_v3 = vmul.f32 0.03125, %v2083_v2  ;;  %v2088_v5 = vmul.f32 %v2086_v1, %v2086_v1 }
 0xbba   : > { %v2087_v6 = vsub.f32 %v2069_v60, %v2085_v3  ;;  %v2090_v7 = vsel %vm1062_vm1, %v2088_v5, 0.0 }
 0xbbb   : > { %2091 = vadd.xlane.f32.xlu1 %v2090_v7 }
 0xbbc   : > { %v2089_v9 = vmul.f32 %v2087_v6, %v2087_v6 }
 0xbbe   : > { %v2093_v10 = vsel %vm1062_vm1, %v2089_v9, 0.0 }
 0xbbf   : > { %2094 = vadd.xlane.f32.xlu1 %v2093_v10 }
 0xc48   : > { %v2092_v13 = vpop.xlane.xlu1 %2091 }
 0xc49   : > { %v2096_v36 = vmul.f32 0.03125, %v2092_v13 }
 0xc4b   : > { %v2098_v15 = vadd.f32 1e-08, %v2096_v36 }
 0xc4c   : > { %v2095_v37 = vpop.xlane.xlu1 %2094 }
 0xc4d   : > { %2752 = vrsqrt.f32 %v2098_v15  ;;  %v2097_v16 = vmul.f32 0.03125, %v2095_v37 }
 0xc4f   : > { %v2099_v18 = vadd.f32 1e-08, %v2097_v16 }
 0xc51   : > { %2754 = vrsqrt.f32 %v2099_v18 }
 0xc57   : > { %v2753_v19 = vpop.eup %2752 }
 0xc58   : > { %v2102_v21 = vmul.f32 %v2753_v19, %v2086_v1 }
 0xc5a   : > { %v2110_v22 = vmul.f32 %v2522_v20, %v2102_v21 }
 0xc5b   : > { %v2755_v23 = vpop.eup %2754 }
 0xc5c   : > { %v2118_v25 = vadd.f32 %v2523_v14, %v2110_v22  ;;  %v2103_v26 = vmul.f32 %v2755_v23, %v2087_v6 }
 0xc5e   : > { %v2122_v27 = vmul.f32 %v2120_v24, %v2118_v25  ;;  %v2111_v28 = vmul.f32 %v2522_v20, %v2103_v26  ;;  %v2147_v32 = vmul.f32 %v2145_v8, %v2118_v25 }
 0xc60   : > { %v2124_v30 = vsel %vm1062_vm1, %v2122_v27, 0.0  ;;  %v2119_v31 = vadd.f32 %v2523_v14, %v2111_v28  ;;  %v2149_v38 = vsel %vm1062_vm1, %v2147_v32, 0.0 }
 0xc61   : > { %2125 = vadd.xlane.f32.xlu0 %v2124_v30 }
 0xc62   : > { %v2123_v34 = vmul.f32 %v2121_v29, %v2119_v31  ;;  %v2148_v4 = vmul.f32 %v2146_v33, %v2119_v31 }
 0xc64   : > { %v2127_v35 = vsel %vm1062_vm1, %v2123_v34, 0.0  ;;  %v2152_v17 = vsel %vm1062_vm1, %v2148_v4, 0.0 }
 0xc65   : > { %2128 = vadd.xlane.f32.xlu1 %v2127_v35  ;;  %2150 = vadd.xlane.f32.xlu0 %v2149_v38 }
 0xc69   : > { %2153 = vadd.xlane.f32.xlu1 %v2152_v17 }
 0xcee   : > { %v2126_v39 = vpop.xlane.xlu0 %2125 }
 0xcef   : > { %v2135_v42 = vrot.slane %v2126_v39, %v2134_v40 }
 0xcf2   : > { %v2129_v41 = vpop.xlane.xlu1 %2128  ;;  %v2151_v44 = vpop.xlane.xlu0 %2150 }
 0xcf3   : > { %v2139_v43 = vrot.slane %v2129_v41, %v2134_v40  ;;  %v2160_v48 = vrot.slane %v2151_v44, %v2134_v40 }
 0xcf5   : > { %v2141_v45 = vsel %vm2140_vm7, %v2139_v43, %v2135_v42 }
 0xcf6   : > { %2144 = vst.msk [vmem:[#allocation3] sm:$0x3] %vm2143_vm8, %v2141_v45  ;;  %v2154_v47 = vpop.xlane.xlu1 %2153 }
 0xcf7   : > { %v2164_v49 = vrot.slane %v2154_v47, %v2134_v40 }
 0xcf9   : > { %v2165_v50 = vsel %vm2140_vm7, %v2164_v49, %v2160_v48 }
 0xcfa   : > { %2167 = vst.msk [vmem:[#allocation5] sm:$0x3] %vm2143_vm8, %v2165_v50 }
 0xcfb PF: > { %s3448_s27 = sld [smem:[#allocation10_spill]]  ;;  %s2845_s4 = smov [#allocation3]  }
 0xcfc   : > { %s2177_s1 = sshll.u32 %s2845_s4, 4  ;;  %s2846_s23 = smov [#allocation5]   ;;  %s2178_s1 = int_to_ptr.vmem [resolvable:$true] %s2177_s1 }
 0xcfd   : > { %s2190_s7 = sshll.u32 %s2846_s23, 4  ;;  %s2756_s26 = scalar_lea.vmem %s2178_s1, 32  ;;  %s3311_s7 = int_to_ptr.vmem [resolvable:$true] %s2190_s7 }
 0xcfe   : > { %p2757_p8 = scmp.ne.s32.totalorder %s2178_s1, %s2756_s26  ;;  %p2763_p11 = scmp.lt.s32.totalorder %s2178_s1, %s2178_s1 }
 0xcff   : > { %p2764_p12 = scmp.lt.s32.totalorder %s2756_s26, %s2756_s26 }
 0xd01   : > { %s3449_s19 = sadd.s32 4294967295, %s3448_s27   ;;  %p2765_p13 = por %p2764_p12, %p2763_p11 }
 0xd02   : > { %p3307_p7 = scmp.eq.s32.totalorder %s3449_s19, 1 }
 0xd04   : > { %p2758_p9 = pnand %p2757_p8, %p3307_p7 }
 0xd06   : > { %p2759_p10 = pneg %p2758_p9 }
 0xd08   : > { %p2766_p0 = pnand %p2765_p13, %p2759_p10 }
 0xd0a   : > { %2769 = shalt.err (!%p2766_p0)
}
 0xd0b   : > { %s3451_s25 = sld [smem:[#allocation26_spill]] }
 0xd11   : > { %s2770_s30 = scalar_lea.hbm %s3451_s25, 32 }
 0xd12   : > { %p2771_p1 = scmp.ne.s32.totalorder %s3451_s25, %s2770_s30  ;;  %p2776_p4 = scmp.lt.u32.totalorder %s2770_s30, %s3451_s25 }
 0xd14   : > { %p2772_p2 = pnand %p2771_p1, %p3307_p7 }
 0xd16   : > { %p2773_p3 = pneg %p2772_p2 }
 0xd18   : > { %p2778_p5 = pnand %p2776_p4, %p2773_p3 }
 0xd1a   : > { %2781 = shalt.err (!%p2778_p5)
}
 0xd1b   : > { %2672 = dma.vmem_to_hbm [thread:$0]  (%p3307_p7), %s2178_s1, 32, %s3451_s25, [#allocation4]  }
 0xd1c   : > { %s2782_s27 = scalar_lea.vmem %s3311_s7, 32  ;;  %p2789_p10 = scmp.lt.s32.totalorder %s3311_s7, %s3311_s7 }
 0xd1d   : > { %p2783_p6 = scmp.ne.s32.totalorder %s3311_s7, %s2782_s27  ;;  %p2790_p11 = scmp.lt.s32.totalorder %s2782_s27, %s2782_s27 }
 0xd1f   : > { %p2784_p8 = pnand %p2783_p6, %p3307_p7  ;;  %p2791_p12 = por %p2790_p11, %p2789_p10 }
 0xd21   : > { %p2785_p9 = pneg %p2784_p8 }
 0xd23   : > { %p2792_p13 = pnand %p2791_p12, %p2785_p9 }
 0xd25   : > { %2795 = shalt.err (!%p2792_p13)
}
 0xd26   : > { %s3452_s23 = sld [smem:[#allocation27_spill]] }
 0xd2c   : > { %s2796_s26 = scalar_lea.hbm %s3452_s23, 32 }
 0xd2d   : > { %p2797_p0 = scmp.ne.s32.totalorder %s3452_s23, %s2796_s26  ;;  %p2802_p3 = scmp.lt.u32.totalorder %s2796_s26, %s3452_s23 }
 0xd2f   : > { %p2798_p1 = pnand %p2797_p0, %p3307_p7 }
 0xd31   : > { %p2799_p2 = pneg %p2798_p1 }
 0xd33   : > { %p2804_p4 = pnand %p2802_p3, %p2799_p2 }
 0xd35   : > { %2807 = shalt.err (!%p2804_p4)
}
 0xd36   : > { %2674 = dma.vmem_to_hbm [thread:$0]  (%p3307_p7), %s3311_s7, 32, %s3452_s23, [#allocation6]  }
 0xd37   : > { %2821 = dma.done.wait (%p3307_p7), [#allocation4], 32  }
 0xd38   : > { %2823 = vsyncadd (%p3307_p7), [#allocation4], 4294967264 }
 0xd39   : > { %2825 = dma.done.wait (%p3307_p7), [#allocation6], 32  }
 0xd3a   : > { %2827 = vsyncadd (%p3307_p7), [#allocation6], 4294967264 }
 0xd3b PF: > { %s3453_s24 = sld [smem:[#allocation10_spill]]  ;;  %s3454_s4 = sld [smem:[#allocation9_spill]] }
 0xd3c   : > { %s3455_s30 = sld [smem:[#allocation11_spill]] }
 0xd41   : > { %s36_s24 = sadd.s32 1, %s3453_s24  }
 0xd42   : > { %p33_p5 = scmp.ge.s32.totalorder %s36_s24, 4  }
 0xd44   :  { %35 = sbr.rel (!%p33_p5) target bundleno = 19 (0x13), region = 210 }
 0xd4b   :  { %2207 = vsyncpa [#allocation4], 1 }
 0xd4c   :  { %2209 = vsyncpa [#allocation4 + $0x1], 1 }
 0xd4d   :  { %2210 = vsyncpa [#allocation6], 1 }

</bundles_post_ra>
